<compile_context>
chip_gen: v6e
topology: v6e:2x2x1
jax: 0.10.0
libtpu: 0.0.40
codegen_flags: <defaults>
</compile_context>

<pallas_src>
import jax
import jax.numpy as jnp
from jax.experimental import pallas as pl
from jax.experimental.pallas import tpu as pltpu

# Small synthetic hyper-parameters consistent with the module's forward.
VOCAB = 100
EMB_DIM = 32      # bert.config.hidden_size
HIDDEN = 32       # hidden_dim
OUT_DIM = 4       # output_dim
BATCH = 2
SEQ = 8
# n_layers = 1, bidirectional = True -> hidden[-2] = fwd final h, hidden[-1] = bwd final h

GATE_STRIDE = 128   # each gate block [gate_fwd | gate_bwd | pad] padded to one 128-lane tile
BATCH_PAD = 8       # per-step rows padded to the f32 sublane count
assert 2 * HIDDEN <= GATE_STRIDE
assert BATCH <= BATCH_PAD


def bertgru_kernel(text_ref,    # SMEM (B, T) int32 token ids
                   emb_ref,     # VMEM (VOCAB, 1, E) f32 embedding table (BERT stub)
                   wih_ref,     # VMEM (2E, 3*GS) bf16 packed input weights (lane-padded gates)
                   bi_ref,      # VMEM (1, 3*GS)  f32  bih (+ bhh folded for r/z gates)
                   whh_ref,     # VMEM (2H, 3*GS) bf16 block-diag recurrent weights (fwd ⊕ bwd)
                   bhhn_ref,    # VMEM (1, 2H)    f32  [bhh_n_fwd | bhh_n_bwd] (inside r*(...))
                   wout_ref,    # VMEM (2H, O)    f32  output Linear weight (rows: [h_fwd ; h_bwd])
                   bout_ref,    # VMEM (1, O)     f32
                   out_ref,     # VMEM (B, O)     f32
                   x2_ref,      # scratch VMEM (T*BP, 2E) f32
                   gi_ref):     # scratch VMEM (T*BP, 3*GS) f32
    B, T = text_ref.shape
    BP = BATCH_PAD
    E = emb_ref.shape[-1]
    H2 = bhhn_ref.shape[1]                  # 2 * hidden
    GS = GATE_STRIDE

    # --- in-kernel embedding lookup (BERT stub) + fwd/bwd packing -----------------
    # Row t*BP+b of x2 holds [ x_t(b) | x_{T-1-t}(b) ]; rows b >= B are zero padding so
    # every per-step slice below starts on an 8-sublane boundary.
    x2_ref[...] = jnp.zeros_like(x2_ref)
    for t in range(T):
        for b in range(B):
            tok = text_ref[b, t]
            v = emb_ref[tok]                                     # (1, E) major-dim dyn index
            rf = t * BP + b
            rb = (T - 1 - t) * BP + b
            x2_ref[rf:rf + 1, 0:E] = v                           # fwd input at step t
            x2_ref[rb:rb + 1, E:2 * E] = v                       # bwd input at step T-1-t

    # --- hoisted input projection: all T steps, both directions, one bf16 matmul ---
    gi_ref[...] = (jnp.dot(x2_ref[...].astype(jnp.bfloat16), wih_ref[...],
                           preferred_element_type=jnp.float32)
                   + bi_ref[...])                                # (T*BP, 3*GS) f32

    whh = whh_ref[...]                                           # (2H, 3*GS) bf16, loop-inv
    bhh_n = jnp.broadcast_to(bhhn_ref[...], (BP, H2))            # broadcast ONCE, pre-loop

    # hidden state carried as a value: [h_fwd | h_bwd]
    h2 = jnp.zeros((BP, H2), jnp.float32)

    # --- recurrence: one fused (BP,2H)x(2H,3*GS) matmul per step, fully unrolled ---
    for t in range(T):
        gi_t = gi_ref[t * BP:(t + 1) * BP, :]                    # 8-sublane-aligned slice
        gh = jnp.dot(h2.astype(jnp.bfloat16), whh,
                     preferred_element_type=jnp.float32)         # (BP, 3*GS)
        # gate blocks start at lane offsets 0 / GS / 2*GS -> vreg-aligned selects
        r = jax.nn.sigmoid(gi_t[:, 0:H2] + gh[:, 0:H2])
        z = jax.nn.sigmoid(gi_t[:, GS:GS + H2] + gh[:, GS:GS + H2])
        n = jnp.tanh(gi_t[:, 2 * GS:2 * GS + H2]
                     + r * (gh[:, 2 * GS:2 * GS + H2] + bhh_n))
        h2 = (1.0 - z) * n + z * h2

    # hidden = dropout(cat(h_fwd, h_bwd)) == h2 at inference (already [h_f | h_b])
    out_full = (jnp.dot(h2, wout_ref[...], preferred_element_type=jnp.float32)
                + bout_ref[...])                                 # (BP, O)
    out_ref[...] = out_full[:B, :]


# ----------------------- one-time parameter packing (init, NOT per call) -----------------------

def _pack_dirs(w_f, w_b):
    """w_f: (Df, 3H), w_b: (Db, 3H), torch gate order [r|z|n] ->
       (Df+Db, 3*GS) with columns [r_f r_b pad | z_f z_b pad | n_f n_b pad] and
       rows [fwd rows ; bwd rows] (block-diagonal across directions)."""
    Df, Db, H = w_f.shape[0], w_b.shape[0], HIDDEN
    big = jnp.zeros((Df + Db, 3 * GATE_STRIDE), jnp.float32)
    for g in range(3):
        c = g * GATE_STRIDE
        big = big.at[:Df, c:c + H].set(w_f[:, g * H:(g + 1) * H])
        big = big.at[Df:, c + H:c + 2 * H].set(w_b[:, g * H:(g + 1) * H])
    return big


def _pack_bias(params):
    """bih folded for all gates; bhh additionally folded for r/z (n keeps bhh_n in-loop)."""
    H = HIDDEN
    b = jnp.zeros((1, 3 * GATE_STRIDE), jnp.float32)
    for g, fold_bhh in ((0, True), (1, True), (2, False)):
        bf = params["bih_f"][:, g * H:(g + 1) * H]
        bb = params["bih_b"][:, g * H:(g + 1) * H]
        if fold_bhh:
            bf = bf + params["bhh_f"][:, g * H:(g + 1) * H]
            bb = bb + params["bhh_b"][:, g * H:(g + 1) * H]
        c = g * GATE_STRIDE
        b = b.at[:, c:c + H].set(bf)
        b = b.at[:, c + H:c + 2 * H].set(bb)
    return b


def init_params(key):
    ks = jax.random.split(key, 11)
    u = lambda k, shape: jax.random.uniform(k, shape, jnp.float32, -0.1, 0.1)
    return dict(
        emb_table=u(ks[0], (VOCAB, EMB_DIM)),
        wih_f=u(ks[1], (EMB_DIM, 3 * HIDDEN)),
        whh_f=u(ks[2], (HIDDEN, 3 * HIDDEN)),
        bih_f=u(ks[3], (1, 3 * HIDDEN)),
        bhh_f=u(ks[4], (1, 3 * HIDDEN)),
        wih_b=u(ks[5], (EMB_DIM, 3 * HIDDEN)),
        whh_b=u(ks[6], (HIDDEN, 3 * HIDDEN)),
        bih_b=u(ks[7], (1, 3 * HIDDEN)),
        bhh_b=u(ks[8], (1, 3 * HIDDEN)),
        wout=u(ks[9], (2 * HIDDEN, OUT_DIM)),
        bout=u(ks[10], (1, OUT_DIM)),
    )


def pack_params(params):
    """Pack/cast all kernel operands once at init; the per-call path only dispatches the kernel."""
    return dict(
        # (VOCAB, 1, E): each row is its own tile so the in-kernel token fetch is a
        # cheap major-dim dynamic index (no dynamic sublane addressing).
        emb=params["emb_table"].reshape(VOCAB, 1, EMB_DIM).astype(jnp.float32),
        wih=_pack_dirs(params["wih_f"], params["wih_b"]).astype(jnp.bfloat16),
        whh=_pack_dirs(params["whh_f"], params["whh_b"]).astype(jnp.bfloat16),
        bi=_pack_bias(params),
        bhh_n=jnp.concatenate([params["bhh_f"][:, 2 * HIDDEN:],
                               params["bhh_b"][:, 2 * HIDDEN:]], axis=1),
        wout=params["wout"],
        bout=params["bout"],
    )


@jax.jit
def bertgru_forward(text, packed):
    B, T = text.shape
    vmem = lambda: pl.BlockSpec(memory_space=pltpu.MemorySpace.VMEM)
    smem = lambda: pl.BlockSpec(memory_space=pltpu.MemorySpace.SMEM)
    # Single pallas_call, no grid: total resident data is <1 MiB, far under scoped VMEM
    # on v5e/v6e/v7x; a grid would only add per-step overhead.
    return pl.pallas_call(
        bertgru_kernel,
        out_shape=jax.ShapeDtypeStruct((B, OUT_DIM), jnp.float32),
        in_specs=[smem(), vmem(), vmem(), vmem(), vmem(), vmem(), vmem(), vmem()],
        out_specs=vmem(),
        scratch_shapes=[
            pltpu.VMEM((T * BATCH_PAD, 2 * EMB_DIM), jnp.float32),       # packed fwd/bwd inputs
            pltpu.VMEM((T * BATCH_PAD, 3 * GATE_STRIDE), jnp.float32),   # hoisted input projection
        ],
    )(text, packed["emb"], packed["wih"], packed["bi"], packed["whh"],
      packed["bhh_n"], packed["wout"], packed["bout"])


def reference_forward(text, params):
    """Pure-JAX f32 reference with identical semantics (for correctness check)."""
    emb = params["emb_table"][text]                                    # (B, T, E)
    B, T, _ = emb.shape
    H = HIDDEN

    def cell(x_t, h, wih, whh, bih, bhh):
        gi = x_t @ wih + bih
        gh = h @ whh + bhh
        r = jax.nn.sigmoid(gi[:, :H] + gh[:, :H])
        z = jax.nn.sigmoid(gi[:, H:2 * H] + gh[:, H:2 * H])
        n = jnp.tanh(gi[:, 2 * H:] + r * gh[:, 2 * H:])
        return (1.0 - z) * n + z * h

    hf = jnp.zeros((B, H), jnp.float32)
    hb = jnp.zeros((B, H), jnp.float32)
    for t in range(T):
        hf = cell(emb[:, t], hf, params["wih_f"], params["whh_f"],
                  params["bih_f"], params["bhh_f"])
        hb = cell(emb[:, T - 1 - t], hb, params["wih_b"], params["whh_b"],
                  params["bih_b"], params["bhh_b"])
    hidden = jnp.concatenate([hf, hb], axis=1)
    return hidden @ params["wout"] + params["bout"]


if __name__ == "__main__":
    key = jax.random.PRNGKey(0)
    kp, kt = jax.random.split(key)
    params = init_params(kp)
    packed = pack_params(params)          # one-time packing, outside the per-call path
    text = jax.random.randint(kt, (BATCH, SEQ), 0, VOCAB, dtype=jnp.int32)

    out = bertgru_forward(text, packed)
    out = jax.block_until_ready(out)

    ref = reference_forward(text, params)
    assert out.shape == (BATCH, OUT_DIM), out.shape
    # Tolerance relaxed vs. pure-f32 because the GRU matmuls run with bf16 operands
    # (f32 accumulation); typical error is O(1e-3).
    assert jnp.allclose(out, ref, atol=3e-2, rtol=3e-2), (out, ref)

    print("KERNEL_OK")
</pallas_src>

<mosaic_0001>
module attributes {stable_mosaic.version = 11 : i64} {
  func.func @bertgru_kernel(%arg0: memref<2x8xi32, #tpu.memory_space<smem>>, %arg1: memref<100x1x32xf32, #tpu.memory_space<vmem>>, %arg2: memref<64x384xbf16, #tpu.memory_space<vmem>>, %arg3: memref<1x384xf32, #tpu.memory_space<vmem>>, %arg4: memref<64x384xbf16, #tpu.memory_space<vmem>>, %arg5: memref<1x64xf32, #tpu.memory_space<vmem>>, %arg6: memref<64x4xf32, #tpu.memory_space<vmem>>, %arg7: memref<1x4xf32, #tpu.memory_space<vmem>>, %arg8: memref<2x4xf32, #tpu.memory_space<vmem>>, %arg9: memref<64x64xf32, #tpu.memory_space<vmem>>, %arg10: memref<64x384xf32, #tpu.memory_space<vmem>>) attributes {dimension_semantics = [], scalar_prefetch = 0 : i64, scratch_operands = 2 : i64, tpu.core_type = #tpu.core_type<tc>} {
    %cst = arith.constant 0.000000e+00 : f32
    %0 = vector.broadcast %cst : f32 to vector<64x64xf32>
    %c0 = arith.constant 0 : index
    %c0_0 = arith.constant 0 : index
    %1 = vector.load %arg9[%c0, %c0_0] : memref<64x64xf32, #tpu.memory_space<vmem>>, vector<64x64xf32>
    tpu.vector_store %arg9[%c0, %c0_0], %0 {strides = array<i32>} : memref<64x64xf32, #tpu.memory_space<vmem>>, vector<64x64xf32>,
    %c0_1 = arith.constant 0 : index
    %c0_2 = arith.constant 0 : index
    %2 = memref.load %arg0[%c0_1, %c0_2] : memref<2x8xi32, #tpu.memory_space<smem>>
    %3 = arith.index_cast %2 : i32 to index
    %c0_3 = arith.constant 0 : index
    %c0_4 = arith.constant 0 : index
    %4 = vector.load %arg1[%3, %c0_3, %c0_4] : memref<100x1x32xf32, #tpu.memory_space<vmem>>, vector<1x1x32xf32>
    %5 = vector.shape_cast %4 : vector<1x1x32xf32> to vector<1x32xf32>
    %c0_5 = arith.constant 0 : index
    %c0_6 = arith.constant 0 : index
    %6 = vector.load %arg9[%c0_5, %c0_6] : memref<64x64xf32, #tpu.memory_space<vmem>>, vector<1x32xf32>
    tpu.vector_store %arg9[%c0_5, %c0_6], %5 {strides = array<i32>} : memref<64x64xf32, #tpu.memory_space<vmem>>, vector<1x32xf32>,
    %c56 = arith.constant 56 : index
    %c32 = arith.constant 32 : index
    %7 = vector.load %arg9[%c56, %c32] : memref<64x64xf32, #tpu.memory_space<vmem>>, vector<1x32xf32>
    tpu.vector_store %arg9[%c56, %c32], %5 {strides = array<i32>} : memref<64x64xf32, #tpu.memory_space<vmem>>, vector<1x32xf32>,
    %c1 = arith.constant 1 : index
    %c0_7 = arith.constant 0 : index
    %8 = memref.load %arg0[%c1, %c0_7] : memref<2x8xi32, #tpu.memory_space<smem>>
    %9 = arith.index_cast %8 : i32 to index
    %c0_8 = arith.constant 0 : index
    %c0_9 = arith.constant 0 : index
    %10 = vector.load %arg1[%9, %c0_8, %c0_9] : memref<100x1x32xf32, #tpu.memory_space<vmem>>, vector<1x1x32xf32>
    %11 = vector.shape_cast %10 : vector<1x1x32xf32> to vector<1x32xf32>
    %c1_10 = arith.constant 1 : index
    %c0_11 = arith.constant 0 : index
    %12 = vector.load %arg9[%c1_10, %c0_11] : memref<64x64xf32, #tpu.memory_space<vmem>>, vector<1x32xf32>
    tpu.vector_store %arg9[%c1_10, %c0_11], %11 {strides = array<i32>} : memref<64x64xf32, #tpu.memory_space<vmem>>, vector<1x32xf32>,
    %c57 = arith.constant 57 : index
    %c32_12 = arith.constant 32 : index
    %13 = vector.load %arg9[%c57, %c32_12] : memref<64x64xf32, #tpu.memory_space<vmem>>, vector<1x32xf32>
    tpu.vector_store %arg9[%c57, %c32_12], %11 {strides = array<i32>} : memref<64x64xf32, #tpu.memory_space<vmem>>, vector<1x32xf32>,
    %c0_13 = arith.constant 0 : index
    %c1_14 = arith.constant 1 : index
    %14 = memref.load %arg0[%c0_13, %c1_14] : memref<2x8xi32, #tpu.memory_space<smem>>
    %15 = arith.index_cast %14 : i32 to index
    %c0_15 = arith.constant 0 : index
    %c0_16 = arith.constant 0 : index
    %16 = vector.load %arg1[%15, %c0_15, %c0_16] : memref<100x1x32xf32, #tpu.memory_space<vmem>>, vector<1x1x32xf32>
    %17 = vector.shape_cast %16 : vector<1x1x32xf32> to vector<1x32xf32>
    %c8 = arith.constant 8 : index
    %c0_17 = arith.constant 0 : index
    %18 = vector.load %arg9[%c8, %c0_17] : memref<64x64xf32, #tpu.memory_space<vmem>>, vector<1x32xf32>
    tpu.vector_store %arg9[%c8, %c0_17], %17 {strides = array<i32>} : memref<64x64xf32, #tpu.memory_space<vmem>>, vector<1x32xf32>,
    %c48 = arith.constant 48 : index
    %c32_18 = arith.constant 32 : index
    %19 = vector.load %arg9[%c48, %c32_18] : memref<64x64xf32, #tpu.memory_space<vmem>>, vector<1x32xf32>
    tpu.vector_store %arg9[%c48, %c32_18], %17 {strides = array<i32>} : memref<64x64xf32, #tpu.memory_space<vmem>>, vector<1x32xf32>,
    %c1_19 = arith.constant 1 : index
    %c1_20 = arith.constant 1 : index
    %20 = memref.load %arg0[%c1_19, %c1_20] : memref<2x8xi32, #tpu.memory_space<smem>>
    %21 = arith.index_cast %20 : i32 to index
    %c0_21 = arith.constant 0 : index
    %c0_22 = arith.constant 0 : index
    %22 = vector.load %arg1[%21, %c0_21, %c0_22] : memref<100x1x32xf32, #tpu.memory_space<vmem>>, vector<1x1x32xf32>
    %23 = vector.shape_cast %22 : vector<1x1x32xf32> to vector<1x32xf32>
    %c9 = arith.constant 9 : index
    %c0_23 = arith.constant 0 : index
    %24 = vector.load %arg9[%c9, %c0_23] : memref<64x64xf32, #tpu.memory_space<vmem>>, vector<1x32xf32>
    tpu.vector_store %arg9[%c9, %c0_23], %23 {strides = array<i32>} : memref<64x64xf32, #tpu.memory_space<vmem>>, vector<1x32xf32>,
    %c49 = arith.constant 49 : index
    %c32_24 = arith.constant 32 : index
    %25 = vector.load %arg9[%c49, %c32_24] : memref<64x64xf32, #tpu.memory_space<vmem>>, vector<1x32xf32>
    tpu.vector_store %arg9[%c49, %c32_24], %23 {strides = array<i32>} : memref<64x64xf32, #tpu.memory_space<vmem>>, vector<1x32xf32>,
    %c0_25 = arith.constant 0 : index
    %c2 = arith.constant 2 : index
    %26 = memref.load %arg0[%c0_25, %c2] : memref<2x8xi32, #tpu.memory_space<smem>>
    %27 = arith.index_cast %26 : i32 to index
    %c0_26 = arith.constant 0 : index
    %c0_27 = arith.constant 0 : index
    %28 = vector.load %arg1[%27, %c0_26, %c0_27] : memref<100x1x32xf32, #tpu.memory_space<vmem>>, vector<1x1x32xf32>
    %29 = vector.shape_cast %28 : vector<1x1x32xf32> to vector<1x32xf32>
    %c16 = arith.constant 16 : index
    %c0_28 = arith.constant 0 : index
    %30 = vector.load %arg9[%c16, %c0_28] : memref<64x64xf32, #tpu.memory_space<vmem>>, vector<1x32xf32>
    tpu.vector_store %arg9[%c16, %c0_28], %29 {strides = array<i32>} : memref<64x64xf32, #tpu.memory_space<vmem>>, vector<1x32xf32>,
    %c40 = arith.constant 40 : index
    %c32_29 = arith.constant 32 : index
    %31 = vector.load %arg9[%c40, %c32_29] : memref<64x64xf32, #tpu.memory_space<vmem>>, vector<1x32xf32>
    tpu.vector_store %arg9[%c40, %c32_29], %29 {strides = array<i32>} : memref<64x64xf32, #tpu.memory_space<vmem>>, vector<1x32xf32>,
    %c1_30 = arith.constant 1 : index
    %c2_31 = arith.constant 2 : index
    %32 = memref.load %arg0[%c1_30, %c2_31] : memref<2x8xi32, #tpu.memory_space<smem>>
    %33 = arith.index_cast %32 : i32 to index
    %c0_32 = arith.constant 0 : index
    %c0_33 = arith.constant 0 : index
    %34 = vector.load %arg1[%33, %c0_32, %c0_33] : memref<100x1x32xf32, #tpu.memory_space<vmem>>, vector<1x1x32xf32>
    %35 = vector.shape_cast %34 : vector<1x1x32xf32> to vector<1x32xf32>
    %c17 = arith.constant 17 : index
    %c0_34 = arith.constant 0 : index
    %36 = vector.load %arg9[%c17, %c0_34] : memref<64x64xf32, #tpu.memory_space<vmem>>, vector<1x32xf32>
    tpu.vector_store %arg9[%c17, %c0_34], %35 {strides = array<i32>} : memref<64x64xf32, #tpu.memory_space<vmem>>, vector<1x32xf32>,
    %c41 = arith.constant 41 : index
    %c32_35 = arith.constant 32 : index
    %37 = vector.load %arg9[%c41, %c32_35] : memref<64x64xf32, #tpu.memory_space<vmem>>, vector<1x32xf32>
    tpu.vector_store %arg9[%c41, %c32_35], %35 {strides = array<i32>} : memref<64x64xf32, #tpu.memory_space<vmem>>, vector<1x32xf32>,
    %c0_36 = arith.constant 0 : index
    %c3 = arith.constant 3 : index
    %38 = memref.load %arg0[%c0_36, %c3] : memref<2x8xi32, #tpu.memory_space<smem>>
    %39 = arith.index_cast %38 : i32 to index
    %c0_37 = arith.constant 0 : index
    %c0_38 = arith.constant 0 : index
    %40 = vector.load %arg1[%39, %c0_37, %c0_38] : memref<100x1x32xf32, #tpu.memory_space<vmem>>, vector<1x1x32xf32>
    %41 = vector.shape_cast %40 : vector<1x1x32xf32> to vector<1x32xf32>
    %c24 = arith.constant 24 : index
    %c0_39 = arith.constant 0 : index
    %42 = vector.load %arg9[%c24, %c0_39] : memref<64x64xf32, #tpu.memory_space<vmem>>, vector<1x32xf32>
    tpu.vector_store %arg9[%c24, %c0_39], %41 {strides = array<i32>} : memref<64x64xf32, #tpu.memory_space<vmem>>, vector<1x32xf32>,
    %c32_40 = arith.constant 32 : index
    %c32_41 = arith.constant 32 : index
    %43 = vector.load %arg9[%c32_40, %c32_41] : memref<64x64xf32, #tpu.memory_space<vmem>>, vector<1x32xf32>
    tpu.vector_store %arg9[%c32_40, %c32_41], %41 {strides = array<i32>} : memref<64x64xf32, #tpu.memory_space<vmem>>, vector<1x32xf32>,
    %c1_42 = arith.constant 1 : index
    %c3_43 = arith.constant 3 : index
    %44 = memref.load %arg0[%c1_42, %c3_43] : memref<2x8xi32, #tpu.memory_space<smem>>
    %45 = arith.index_cast %44 : i32 to index
    %c0_44 = arith.constant 0 : index
    %c0_45 = arith.constant 0 : index
    %46 = vector.load %arg1[%45, %c0_44, %c0_45] : memref<100x1x32xf32, #tpu.memory_space<vmem>>, vector<1x1x32xf32>
    %47 = vector.shape_cast %46 : vector<1x1x32xf32> to vector<1x32xf32>
    %c25 = arith.constant 25 : index
    %c0_46 = arith.constant 0 : index
    %48 = vector.load %arg9[%c25, %c0_46] : memref<64x64xf32, #tpu.memory_space<vmem>>, vector<1x32xf32>
    tpu.vector_store %arg9[%c25, %c0_46], %47 {strides = array<i32>} : memref<64x64xf32, #tpu.memory_space<vmem>>, vector<1x32xf32>,
    %c33 = arith.constant 33 : index
    %c32_47 = arith.constant 32 : index
    %49 = vector.load %arg9[%c33, %c32_47] : memref<64x64xf32, #tpu.memory_space<vmem>>, vector<1x32xf32>
    tpu.vector_store %arg9[%c33, %c32_47], %47 {strides = array<i32>} : memref<64x64xf32, #tpu.memory_space<vmem>>, vector<1x32xf32>,
    %c0_48 = arith.constant 0 : index
    %c4 = arith.constant 4 : index
    %50 = memref.load %arg0[%c0_48, %c4] : memref<2x8xi32, #tpu.memory_space<smem>>
    %51 = arith.index_cast %50 : i32 to index
    %c0_49 = arith.constant 0 : index
    %c0_50 = arith.constant 0 : index
    %52 = vector.load %arg1[%51, %c0_49, %c0_50] : memref<100x1x32xf32, #tpu.memory_space<vmem>>, vector<1x1x32xf32>
    %53 = vector.shape_cast %52 : vector<1x1x32xf32> to vector<1x32xf32>
    %c32_51 = arith.constant 32 : index
    %c0_52 = arith.constant 0 : index
    %54 = vector.load %arg9[%c32_51, %c0_52] : memref<64x64xf32, #tpu.memory_space<vmem>>, vector<1x32xf32>
    tpu.vector_store %arg9[%c32_51, %c0_52], %53 {strides = array<i32>} : memref<64x64xf32, #tpu.memory_space<vmem>>, vector<1x32xf32>,
    %c24_53 = arith.constant 24 : index
    %c32_54 = arith.constant 32 : index
    %55 = vector.load %arg9[%c24_53, %c32_54] : memref<64x64xf32, #tpu.memory_space<vmem>>, vector<1x32xf32>
    tpu.vector_store %arg9[%c24_53, %c32_54], %53 {strides = array<i32>} : memref<64x64xf32, #tpu.memory_space<vmem>>, vector<1x32xf32>,
    %c1_55 = arith.constant 1 : index
    %c4_56 = arith.constant 4 : index
    %56 = memref.load %arg0[%c1_55, %c4_56] : memref<2x8xi32, #tpu.memory_space<smem>>
    %57 = arith.index_cast %56 : i32 to index
    %c0_57 = arith.constant 0 : index
    %c0_58 = arith.constant 0 : index
    %58 = vector.load %arg1[%57, %c0_57, %c0_58] : memref<100x1x32xf32, #tpu.memory_space<vmem>>, vector<1x1x32xf32>
    %59 = vector.shape_cast %58 : vector<1x1x32xf32> to vector<1x32xf32>
    %c33_59 = arith.constant 33 : index
    %c0_60 = arith.constant 0 : index
    %60 = vector.load %arg9[%c33_59, %c0_60] : memref<64x64xf32, #tpu.memory_space<vmem>>, vector<1x32xf32>
    tpu.vector_store %arg9[%c33_59, %c0_60], %59 {strides = array<i32>} : memref<64x64xf32, #tpu.memory_space<vmem>>, vector<1x32xf32>,
    %c25_61 = arith.constant 25 : index
    %c32_62 = arith.constant 32 : index
    %61 = vector.load %arg9[%c25_61, %c32_62] : memref<64x64xf32, #tpu.memory_space<vmem>>, vector<1x32xf32>
    tpu.vector_store %arg9[%c25_61, %c32_62], %59 {strides = array<i32>} : memref<64x64xf32, #tpu.memory_space<vmem>>, vector<1x32xf32>,
    %c0_63 = arith.constant 0 : index
    %c5 = arith.constant 5 : index
    %62 = memref.load %arg0[%c0_63, %c5] : memref<2x8xi32, #tpu.memory_space<smem>>
    %63 = arith.index_cast %62 : i32 to index
    %c0_64 = arith.constant 0 : index
    %c0_65 = arith.constant 0 : index
    %64 = vector.load %arg1[%63, %c0_64, %c0_65] : memref<100x1x32xf32, #tpu.memory_space<vmem>>, vector<1x1x32xf32>
    %65 = vector.shape_cast %64 : vector<1x1x32xf32> to vector<1x32xf32>
    %c40_66 = arith.constant 40 : index
    %c0_67 = arith.constant 0 : index
    %66 = vector.load %arg9[%c40_66, %c0_67] : memref<64x64xf32, #tpu.memory_space<vmem>>, vector<1x32xf32>
    tpu.vector_store %arg9[%c40_66, %c0_67], %65 {strides = array<i32>} : memref<64x64xf32, #tpu.memory_space<vmem>>, vector<1x32xf32>,
    %c16_68 = arith.constant 16 : index
    %c32_69 = arith.constant 32 : index
    %67 = vector.load %arg9[%c16_68, %c32_69] : memref<64x64xf32, #tpu.memory_space<vmem>>, vector<1x32xf32>
    tpu.vector_store %arg9[%c16_68, %c32_69], %65 {strides = array<i32>} : memref<64x64xf32, #tpu.memory_space<vmem>>, vector<1x32xf32>,
    %c1_70 = arith.constant 1 : index
    %c5_71 = arith.constant 5 : index
    %68 = memref.load %arg0[%c1_70, %c5_71] : memref<2x8xi32, #tpu.memory_space<smem>>
    %69 = arith.index_cast %68 : i32 to index
    %c0_72 = arith.constant 0 : index
    %c0_73 = arith.constant 0 : index
    %70 = vector.load %arg1[%69, %c0_72, %c0_73] : memref<100x1x32xf32, #tpu.memory_space<vmem>>, vector<1x1x32xf32>
    %71 = vector.shape_cast %70 : vector<1x1x32xf32> to vector<1x32xf32>
    %c41_74 = arith.constant 41 : index
    %c0_75 = arith.constant 0 : index
    %72 = vector.load %arg9[%c41_74, %c0_75] : memref<64x64xf32, #tpu.memory_space<vmem>>, vector<1x32xf32>
    tpu.vector_store %arg9[%c41_74, %c0_75], %71 {strides = array<i32>} : memref<64x64xf32, #tpu.memory_space<vmem>>, vector<1x32xf32>,
    %c17_76 = arith.constant 17 : index
    %c32_77 = arith.constant 32 : index
    %73 = vector.load %arg9[%c17_76, %c32_77] : memref<64x64xf32, #tpu.memory_space<vmem>>, vector<1x32xf32>
    tpu.vector_store %arg9[%c17_76, %c32_77], %71 {strides = array<i32>} : memref<64x64xf32, #tpu.memory_space<vmem>>, vector<1x32xf32>,
    %c0_78 = arith.constant 0 : index
    %c6 = arith.constant 6 : index
    %74 = memref.load %arg0[%c0_78, %c6] : memref<2x8xi32, #tpu.memory_space<smem>>
    %75 = arith.index_cast %74 : i32 to index
    %c0_79 = arith.constant 0 : index
    %c0_80 = arith.constant 0 : index
    %76 = vector.load %arg1[%75, %c0_79, %c0_80] : memref<100x1x32xf32, #tpu.memory_space<vmem>>, vector<1x1x32xf32>
    %77 = vector.shape_cast %76 : vector<1x1x32xf32> to vector<1x32xf32>
    %c48_81 = arith.constant 48 : index
    %c0_82 = arith.constant 0 : index
    %78 = vector.load %arg9[%c48_81, %c0_82] : memref<64x64xf32, #tpu.memory_space<vmem>>, vector<1x32xf32>
    tpu.vector_store %arg9[%c48_81, %c0_82], %77 {strides = array<i32>} : memref<64x64xf32, #tpu.memory_space<vmem>>, vector<1x32xf32>,
    %c8_83 = arith.constant 8 : index
    %c32_84 = arith.constant 32 : index
    %79 = vector.load %arg9[%c8_83, %c32_84] : memref<64x64xf32, #tpu.memory_space<vmem>>, vector<1x32xf32>
    tpu.vector_store %arg9[%c8_83, %c32_84], %77 {strides = array<i32>} : memref<64x64xf32, #tpu.memory_space<vmem>>, vector<1x32xf32>,
    %c1_85 = arith.constant 1 : index
    %c6_86 = arith.constant 6 : index
    %80 = memref.load %arg0[%c1_85, %c6_86] : memref<2x8xi32, #tpu.memory_space<smem>>
    %81 = arith.index_cast %80 : i32 to index
    %c0_87 = arith.constant 0 : index
    %c0_88 = arith.constant 0 : index
    %82 = vector.load %arg1[%81, %c0_87, %c0_88] : memref<100x1x32xf32, #tpu.memory_space<vmem>>, vector<1x1x32xf32>
    %83 = vector.shape_cast %82 : vector<1x1x32xf32> to vector<1x32xf32>
    %c49_89 = arith.constant 49 : index
    %c0_90 = arith.constant 0 : index
    %84 = vector.load %arg9[%c49_89, %c0_90] : memref<64x64xf32, #tpu.memory_space<vmem>>, vector<1x32xf32>
    tpu.vector_store %arg9[%c49_89, %c0_90], %83 {strides = array<i32>} : memref<64x64xf32, #tpu.memory_space<vmem>>, vector<1x32xf32>,
    %c9_91 = arith.constant 9 : index
    %c32_92 = arith.constant 32 : index
    %85 = vector.load %arg9[%c9_91, %c32_92] : memref<64x64xf32, #tpu.memory_space<vmem>>, vector<1x32xf32>
    tpu.vector_store %arg9[%c9_91, %c32_92], %83 {strides = array<i32>} : memref<64x64xf32, #tpu.memory_space<vmem>>, vector<1x32xf32>,
    %c0_93 = arith.constant 0 : index
    %c7 = arith.constant 7 : index
    %86 = memref.load %arg0[%c0_93, %c7] : memref<2x8xi32, #tpu.memory_space<smem>>
    %87 = arith.index_cast %86 : i32 to index
    %c0_94 = arith.constant 0 : index
    %c0_95 = arith.constant 0 : index
    %88 = vector.load %arg1[%87, %c0_94, %c0_95] : memref<100x1x32xf32, #tpu.memory_space<vmem>>, vector<1x1x32xf32>
    %89 = vector.shape_cast %88 : vector<1x1x32xf32> to vector<1x32xf32>
    %c56_96 = arith.constant 56 : index
    %c0_97 = arith.constant 0 : index
    %90 = vector.load %arg9[%c56_96, %c0_97] : memref<64x64xf32, #tpu.memory_space<vmem>>, vector<1x32xf32>
    tpu.vector_store %arg9[%c56_96, %c0_97], %89 {strides = array<i32>} : memref<64x64xf32, #tpu.memory_space<vmem>>, vector<1x32xf32>,
    %c0_98 = arith.constant 0 : index
    %c32_99 = arith.constant 32 : index
    %91 = vector.load %arg9[%c0_98, %c32_99] : memref<64x64xf32, #tpu.memory_space<vmem>>, vector<1x32xf32>
    tpu.vector_store %arg9[%c0_98, %c32_99], %89 {strides = array<i32>} : memref<64x64xf32, #tpu.memory_space<vmem>>, vector<1x32xf32>,
    %c1_100 = arith.constant 1 : index
    %c7_101 = arith.constant 7 : index
    %92 = memref.load %arg0[%c1_100, %c7_101] : memref<2x8xi32, #tpu.memory_space<smem>>
    %93 = arith.index_cast %92 : i32 to index
    %c0_102 = arith.constant 0 : index
    %c0_103 = arith.constant 0 : index
    %94 = vector.load %arg1[%93, %c0_102, %c0_103] : memref<100x1x32xf32, #tpu.memory_space<vmem>>, vector<1x1x32xf32>
    %95 = vector.shape_cast %94 : vector<1x1x32xf32> to vector<1x32xf32>
    %c57_104 = arith.constant 57 : index
    %c0_105 = arith.constant 0 : index
    %96 = vector.load %arg9[%c57_104, %c0_105] : memref<64x64xf32, #tpu.memory_space<vmem>>, vector<1x32xf32>
    tpu.vector_store %arg9[%c57_104, %c0_105], %95 {strides = array<i32>} : memref<64x64xf32, #tpu.memory_space<vmem>>, vector<1x32xf32>,
    %c1_106 = arith.constant 1 : index
    %c32_107 = arith.constant 32 : index
    %97 = vector.load %arg9[%c1_106, %c32_107] : memref<64x64xf32, #tpu.memory_space<vmem>>, vector<1x32xf32>
    tpu.vector_store %arg9[%c1_106, %c32_107], %95 {strides = array<i32>} : memref<64x64xf32, #tpu.memory_space<vmem>>, vector<1x32xf32>,
    %c0_108 = arith.constant 0 : index
    %c0_109 = arith.constant 0 : index
    %98 = vector.load %arg9[%c0_108, %c0_109] : memref<64x64xf32, #tpu.memory_space<vmem>>, vector<64x64xf32>
    %99 = arith.truncf %98 : vector<64x64xf32> to vector<64x64xbf16>
    %c0_110 = arith.constant 0 : index
    %c0_111 = arith.constant 0 : index
    %100 = vector.load %arg2[%c0_110, %c0_111] : memref<64x384xbf16, #tpu.memory_space<vmem>>, vector<64x384xbf16>
    %cst_112 = arith.constant dense<0.000000e+00> : vector<64x384xf32>
    %101 = tpu.matmul %99, %100, %cst_112 {dimension_numbers = #tpu.dot_dimension_numbers<[1], [0], [0], [1], [0, 0, 1, 1], [], []>} : vector<64x64xbf16>, vector<64x384xbf16>, vector<64x384xf32> -> vector<64x384xf32>
    %c0_113 = arith.constant 0 : index
    %c0_114 = arith.constant 0 : index
    %102 = vector.load %arg3[%c0_113, %c0_114] : memref<1x384xf32, #tpu.memory_space<vmem>>, vector<1x384xf32>
    %103 = vector.broadcast %102 : vector<1x384xf32> to vector<64x384xf32>
    %104 = arith.addf %101, %103 : vector<64x384xf32>
    %c0_115 = arith.constant 0 : index
    %c0_116 = arith.constant 0 : index
    %105 = vector.load %arg10[%c0_115, %c0_116] : memref<64x384xf32, #tpu.memory_space<vmem>>, vector<64x384xf32>
    tpu.vector_store %arg10[%c0_115, %c0_116], %104 {strides = array<i32>} : memref<64x384xf32, #tpu.memory_space<vmem>>, vector<64x384xf32>,
    %c0_117 = arith.constant 0 : index
    %c0_118 = arith.constant 0 : index
    %106 = vector.load %arg4[%c0_117, %c0_118] : memref<64x384xbf16, #tpu.memory_space<vmem>>, vector<64x384xbf16>
    %c0_119 = arith.constant 0 : index
    %c0_120 = arith.constant 0 : index
    %107 = vector.load %arg5[%c0_119, %c0_120] : memref<1x64xf32, #tpu.memory_space<vmem>>, vector<1x64xf32>
    %108 = vector.shape_cast %107 : vector<1x64xf32> to vector<1x64xf32>
    %109 = vector.broadcast %108 : vector<1x64xf32> to vector<8x64xf32>
    %cst_121 = arith.constant 0.000000e+00 : f32
    %110 = vector.broadcast %cst_121 : f32 to vector<8x64xf32>
    %c0_122 = arith.constant 0 : index
    %c0_123 = arith.constant 0 : index
    %111 = vector.load %arg10[%c0_122, %c0_123] : memref<64x384xf32, #tpu.memory_space<vmem>>, vector<8x384xf32>
    %112 = arith.truncf %110 : vector<8x64xf32> to vector<8x64xbf16>
    %cst_124 = arith.constant dense<0.000000e+00> : vector<8x384xf32>
    %113 = tpu.matmul %112, %106, %cst_124 {dimension_numbers = #tpu.dot_dimension_numbers<[1], [0], [0], [1], [0, 0, 1, 1], [], []>} : vector<8x64xbf16>, vector<64x384xbf16>, vector<8x384xf32> -> vector<8x384xf32>
    %114 = vector.extract_strided_slice %111 {offsets = [0, 0], sizes = [8, 64], strides = [1, 1]} : vector<8x384xf32> to vector<8x64xf32>
    %115 = vector.extract_strided_slice %113 {offsets = [0, 0], sizes = [8, 64], strides = [1, 1]} : vector<8x384xf32> to vector<8x64xf32>
    %116 = arith.addf %114, %115 : vector<8x64xf32>
    %117 = arith.negf %116 : vector<8x64xf32>
    %118 = math.exp %117 : vector<8x64xf32>
    %cst_125 = arith.constant 1.000000e+00 : f32
    %119 = vector.broadcast %cst_125 : f32 to vector<8x64xf32>
    %120 = arith.addf %119, %118 : vector<8x64xf32>
    %121 = arith.divf %119, %120 : vector<8x64xf32>
    %122 = vector.extract_strided_slice %111 {offsets = [0, 128], sizes = [8, 64], strides = [1, 1]} : vector<8x384xf32> to vector<8x64xf32>
    %123 = vector.extract_strided_slice %113 {offsets = [0, 128], sizes = [8, 64], strides = [1, 1]} : vector<8x384xf32> to vector<8x64xf32>
    %124 = arith.addf %122, %123 : vector<8x64xf32>
    %125 = arith.negf %124 : vector<8x64xf32>
    %126 = math.exp %125 : vector<8x64xf32>
    %cst_126 = arith.constant 1.000000e+00 : f32
    %127 = vector.broadcast %cst_126 : f32 to vector<8x64xf32>
    %128 = arith.addf %127, %126 : vector<8x64xf32>
    %129 = arith.divf %127, %128 : vector<8x64xf32>
    %130 = vector.extract_strided_slice %111 {offsets = [0, 256], sizes = [8, 64], strides = [1, 1]} : vector<8x384xf32> to vector<8x64xf32>
    %131 = vector.extract_strided_slice %113 {offsets = [0, 256], sizes = [8, 64], strides = [1, 1]} : vector<8x384xf32> to vector<8x64xf32>
    %132 = arith.addf %131, %109 : vector<8x64xf32>
    %133 = arith.mulf %121, %132 : vector<8x64xf32>
    %134 = arith.addf %130, %133 : vector<8x64xf32>
    %135 = math.tanh %134 : vector<8x64xf32>
    %cst_127 = arith.constant 1.000000e+00 : f32
    %136 = vector.broadcast %cst_127 : f32 to vector<8x64xf32>
    %137 = arith.subf %136, %129 : vector<8x64xf32>
    %138 = arith.mulf %137, %135 : vector<8x64xf32>
    %139 = arith.mulf %129, %110 : vector<8x64xf32>
    %140 = arith.addf %138, %139 : vector<8x64xf32>
    %c8_128 = arith.constant 8 : index
    %c0_129 = arith.constant 0 : index
    %141 = vector.load %arg10[%c8_128, %c0_129] : memref<64x384xf32, #tpu.memory_space<vmem>>, vector<8x384xf32>
    %142 = arith.truncf %140 : vector<8x64xf32> to vector<8x64xbf16>
    %cst_130 = arith.constant dense<0.000000e+00> : vector<8x384xf32>
    %143 = tpu.matmul %142, %106, %cst_130 {dimension_numbers = #tpu.dot_dimension_numbers<[1], [0], [0], [1], [0, 0, 1, 1], [], []>} : vector<8x64xbf16>, vector<64x384xbf16>, vector<8x384xf32> -> vector<8x384xf32>
    %144 = vector.extract_strided_slice %141 {offsets = [0, 0], sizes = [8, 64], strides = [1, 1]} : vector<8x384xf32> to vector<8x64xf32>
    %145 = vector.extract_strided_slice %143 {offsets = [0, 0], sizes = [8, 64], strides = [1, 1]} : vector<8x384xf32> to vector<8x64xf32>
    %146 = arith.addf %144, %145 : vector<8x64xf32>
    %147 = arith.negf %146 : vector<8x64xf32>
    %148 = math.exp %147 : vector<8x64xf32>
    %cst_131 = arith.constant 1.000000e+00 : f32
    %149 = vector.broadcast %cst_131 : f32 to vector<8x64xf32>
    %150 = arith.addf %149, %148 : vector<8x64xf32>
    %151 = arith.divf %149, %150 : vector<8x64xf32>
    %152 = vector.extract_strided_slice %141 {offsets = [0, 128], sizes = [8, 64], strides = [1, 1]} : vector<8x384xf32> to vector<8x64xf32>
    %153 = vector.extract_strided_slice %143 {offsets = [0, 128], sizes = [8, 64], strides = [1, 1]} : vector<8x384xf32> to vector<8x64xf32>
    %154 = arith.addf %152, %153 : vector<8x64xf32>
    %155 = arith.negf %154 : vector<8x64xf32>
    %156 = math.exp %155 : vector<8x64xf32>
    %cst_132 = arith.constant 1.000000e+00 : f32
    %157 = vector.broadcast %cst_132 : f32 to vector<8x64xf32>
    %158 = arith.addf %157, %156 : vector<8x64xf32>
    %159 = arith.divf %157, %158 : vector<8x64xf32>
    %160 = vector.extract_strided_slice %141 {offsets = [0, 256], sizes = [8, 64], strides = [1, 1]} : vector<8x384xf32> to vector<8x64xf32>
    %161 = vector.extract_strided_slice %143 {offsets = [0, 256], sizes = [8, 64], strides = [1, 1]} : vector<8x384xf32> to vector<8x64xf32>
    %162 = arith.addf %161, %109 : vector<8x64xf32>
    %163 = arith.mulf %151, %162 : vector<8x64xf32>
    %164 = arith.addf %160, %163 : vector<8x64xf32>
    %165 = math.tanh %164 : vector<8x64xf32>
    %cst_133 = arith.constant 1.000000e+00 : f32
    %166 = vector.broadcast %cst_133 : f32 to vector<8x64xf32>
    %167 = arith.subf %166, %159 : vector<8x64xf32>
    %168 = arith.mulf %167, %165 : vector<8x64xf32>
    %169 = arith.mulf %159, %140 : vector<8x64xf32>
    %170 = arith.addf %168, %169 : vector<8x64xf32>
    %c16_134 = arith.constant 16 : index
    %c0_135 = arith.constant 0 : index
    %171 = vector.load %arg10[%c16_134, %c0_135] : memref<64x384xf32, #tpu.memory_space<vmem>>, vector<8x384xf32>
    %172 = arith.truncf %170 : vector<8x64xf32> to vector<8x64xbf16>
    %cst_136 = arith.constant dense<0.000000e+00> : vector<8x384xf32>
    %173 = tpu.matmul %172, %106, %cst_136 {dimension_numbers = #tpu.dot_dimension_numbers<[1], [0], [0], [1], [0, 0, 1, 1], [], []>} : vector<8x64xbf16>, vector<64x384xbf16>, vector<8x384xf32> -> vector<8x384xf32>
    %174 = vector.extract_strided_slice %171 {offsets = [0, 0], sizes = [8, 64], strides = [1, 1]} : vector<8x384xf32> to vector<8x64xf32>
    %175 = vector.extract_strided_slice %173 {offsets = [0, 0], sizes = [8, 64], strides = [1, 1]} : vector<8x384xf32> to vector<8x64xf32>
    %176 = arith.addf %174, %175 : vector<8x64xf32>
    %177 = arith.negf %176 : vector<8x64xf32>
    %178 = math.exp %177 : vector<8x64xf32>
    %cst_137 = arith.constant 1.000000e+00 : f32
    %179 = vector.broadcast %cst_137 : f32 to vector<8x64xf32>
    %180 = arith.addf %179, %178 : vector<8x64xf32>
    %181 = arith.divf %179, %180 : vector<8x64xf32>
    %182 = vector.extract_strided_slice %171 {offsets = [0, 128], sizes = [8, 64], strides = [1, 1]} : vector<8x384xf32> to vector<8x64xf32>
    %183 = vector.extract_strided_slice %173 {offsets = [0, 128], sizes = [8, 64], strides = [1, 1]} : vector<8x384xf32> to vector<8x64xf32>
    %184 = arith.addf %182, %183 : vector<8x64xf32>
    %185 = arith.negf %184 : vector<8x64xf32>
    %186 = math.exp %185 : vector<8x64xf32>
    %cst_138 = arith.constant 1.000000e+00 : f32
    %187 = vector.broadcast %cst_138 : f32 to vector<8x64xf32>
    %188 = arith.addf %187, %186 : vector<8x64xf32>
    %189 = arith.divf %187, %188 : vector<8x64xf32>
    %190 = vector.extract_strided_slice %171 {offsets = [0, 256], sizes = [8, 64], strides = [1, 1]} : vector<8x384xf32> to vector<8x64xf32>
    %191 = vector.extract_strided_slice %173 {offsets = [0, 256], sizes = [8, 64], strides = [1, 1]} : vector<8x384xf32> to vector<8x64xf32>
    %192 = arith.addf %191, %109 : vector<8x64xf32>
    %193 = arith.mulf %181, %192 : vector<8x64xf32>
    %194 = arith.addf %190, %193 : vector<8x64xf32>
    %195 = math.tanh %194 : vector<8x64xf32>
    %cst_139 = arith.constant 1.000000e+00 : f32
    %196 = vector.broadcast %cst_139 : f32 to vector<8x64xf32>
    %197 = arith.subf %196, %189 : vector<8x64xf32>
    %198 = arith.mulf %197, %195 : vector<8x64xf32>
    %199 = arith.mulf %189, %170 : vector<8x64xf32>
    %200 = arith.addf %198, %199 : vector<8x64xf32>
    %c24_140 = arith.constant 24 : index
    %c0_141 = arith.constant 0 : index
    %201 = vector.load %arg10[%c24_140, %c0_141] : memref<64x384xf32, #tpu.memory_space<vmem>>, vector<8x384xf32>
    %202 = arith.truncf %200 : vector<8x64xf32> to vector<8x64xbf16>
    %cst_142 = arith.constant dense<0.000000e+00> : vector<8x384xf32>
    %203 = tpu.matmul %202, %106, %cst_142 {dimension_numbers = #tpu.dot_dimension_numbers<[1], [0], [0], [1], [0, 0, 1, 1], [], []>} : vector<8x64xbf16>, vector<64x384xbf16>, vector<8x384xf32> -> vector<8x384xf32>
    %204 = vector.extract_strided_slice %201 {offsets = [0, 0], sizes = [8, 64], strides = [1, 1]} : vector<8x384xf32> to vector<8x64xf32>
    %205 = vector.extract_strided_slice %203 {offsets = [0, 0], sizes = [8, 64], strides = [1, 1]} : vector<8x384xf32> to vector<8x64xf32>
    %206 = arith.addf %204, %205 : vector<8x64xf32>
    %207 = arith.negf %206 : vector<8x64xf32>
    %208 = math.exp %207 : vector<8x64xf32>
    %cst_143 = arith.constant 1.000000e+00 : f32
    %209 = vector.broadcast %cst_143 : f32 to vector<8x64xf32>
    %210 = arith.addf %209, %208 : vector<8x64xf32>
    %211 = arith.divf %209, %210 : vector<8x64xf32>
    %212 = vector.extract_strided_slice %201 {offsets = [0, 128], sizes = [8, 64], strides = [1, 1]} : vector<8x384xf32> to vector<8x64xf32>
    %213 = vector.extract_strided_slice %203 {offsets = [0, 128], sizes = [8, 64], strides = [1, 1]} : vector<8x384xf32> to vector<8x64xf32>
    %214 = arith.addf %212, %213 : vector<8x64xf32>
    %215 = arith.negf %214 : vector<8x64xf32>
    %216 = math.exp %215 : vector<8x64xf32>
    %cst_144 = arith.constant 1.000000e+00 : f32
    %217 = vector.broadcast %cst_144 : f32 to vector<8x64xf32>
    %218 = arith.addf %217, %216 : vector<8x64xf32>
    %219 = arith.divf %217, %218 : vector<8x64xf32>
    %220 = vector.extract_strided_slice %201 {offsets = [0, 256], sizes = [8, 64], strides = [1, 1]} : vector<8x384xf32> to vector<8x64xf32>
    %221 = vector.extract_strided_slice %203 {offsets = [0, 256], sizes = [8, 64], strides = [1, 1]} : vector<8x384xf32> to vector<8x64xf32>
    %222 = arith.addf %221, %109 : vector<8x64xf32>
    %223 = arith.mulf %211, %222 : vector<8x64xf32>
    %224 = arith.addf %220, %223 : vector<8x64xf32>
    %225 = math.tanh %224 : vector<8x64xf32>
    %cst_145 = arith.constant 1.000000e+00 : f32
    %226 = vector.broadcast %cst_145 : f32 to vector<8x64xf32>
    %227 = arith.subf %226, %219 : vector<8x64xf32>
    %228 = arith.mulf %227, %225 : vector<8x64xf32>
    %229 = arith.mulf %219, %200 : vector<8x64xf32>
    %230 = arith.addf %228, %229 : vector<8x64xf32>
    %c32_146 = arith.constant 32 : index
    %c0_147 = arith.constant 0 : index
    %231 = vector.load %arg10[%c32_146, %c0_147] : memref<64x384xf32, #tpu.memory_space<vmem>>, vector<8x384xf32>
    %232 = arith.truncf %230 : vector<8x64xf32> to vector<8x64xbf16>
    %cst_148 = arith.constant dense<0.000000e+00> : vector<8x384xf32>
    %233 = tpu.matmul %232, %106, %cst_148 {dimension_numbers = #tpu.dot_dimension_numbers<[1], [0], [0], [1], [0, 0, 1, 1], [], []>} : vector<8x64xbf16>, vector<64x384xbf16>, vector<8x384xf32> -> vector<8x384xf32>
    %234 = vector.extract_strided_slice %231 {offsets = [0, 0], sizes = [8, 64], strides = [1, 1]} : vector<8x384xf32> to vector<8x64xf32>
    %235 = vector.extract_strided_slice %233 {offsets = [0, 0], sizes = [8, 64], strides = [1, 1]} : vector<8x384xf32> to vector<8x64xf32>
    %236 = arith.addf %234, %235 : vector<8x64xf32>
    %237 = arith.negf %236 : vector<8x64xf32>
    %238 = math.exp %237 : vector<8x64xf32>
    %cst_149 = arith.constant 1.000000e+00 : f32
    %239 = vector.broadcast %cst_149 : f32 to vector<8x64xf32>
    %240 = arith.addf %239, %238 : vector<8x64xf32>
    %241 = arith.divf %239, %240 : vector<8x64xf32>
    %242 = vector.extract_strided_slice %231 {offsets = [0, 128], sizes = [8, 64], strides = [1, 1]} : vector<8x384xf32> to vector<8x64xf32>
    %243 = vector.extract_strided_slice %233 {offsets = [0, 128], sizes = [8, 64], strides = [1, 1]} : vector<8x384xf32> to vector<8x64xf32>
    %244 = arith.addf %242, %243 : vector<8x64xf32>
    %245 = arith.negf %244 : vector<8x64xf32>
    %246 = math.exp %245 : vector<8x64xf32>
    %cst_150 = arith.constant 1.000000e+00 : f32
    %247 = vector.broadcast %cst_150 : f32 to vector<8x64xf32>
    %248 = arith.addf %247, %246 : vector<8x64xf32>
    %249 = arith.divf %247, %248 : vector<8x64xf32>
    %250 = vector.extract_strided_slice %231 {offsets = [0, 256], sizes = [8, 64], strides = [1, 1]} : vector<8x384xf32> to vector<8x64xf32>
    %251 = vector.extract_strided_slice %233 {offsets = [0, 256], sizes = [8, 64], strides = [1, 1]} : vector<8x384xf32> to vector<8x64xf32>
    %252 = arith.addf %251, %109 : vector<8x64xf32>
    %253 = arith.mulf %241, %252 : vector<8x64xf32>
    %254 = arith.addf %250, %253 : vector<8x64xf32>
    %255 = math.tanh %254 : vector<8x64xf32>
    %cst_151 = arith.constant 1.000000e+00 : f32
    %256 = vector.broadcast %cst_151 : f32 to vector<8x64xf32>
    %257 = arith.subf %256, %249 : vector<8x64xf32>
    %258 = arith.mulf %257, %255 : vector<8x64xf32>
    %259 = arith.mulf %249, %230 : vector<8x64xf32>
    %260 = arith.addf %258, %259 : vector<8x64xf32>
    %c40_152 = arith.constant 40 : index
    %c0_153 = arith.constant 0 : index
    %261 = vector.load %arg10[%c40_152, %c0_153] : memref<64x384xf32, #tpu.memory_space<vmem>>, vector<8x384xf32>
    %262 = arith.truncf %260 : vector<8x64xf32> to vector<8x64xbf16>
    %cst_154 = arith.constant dense<0.000000e+00> : vector<8x384xf32>
    %263 = tpu.matmul %262, %106, %cst_154 {dimension_numbers = #tpu.dot_dimension_numbers<[1], [0], [0], [1], [0, 0, 1, 1], [], []>} : vector<8x64xbf16>, vector<64x384xbf16>, vector<8x384xf32> -> vector<8x384xf32>
    %264 = vector.extract_strided_slice %261 {offsets = [0, 0], sizes = [8, 64], strides = [1, 1]} : vector<8x384xf32> to vector<8x64xf32>
    %265 = vector.extract_strided_slice %263 {offsets = [0, 0], sizes = [8, 64], strides = [1, 1]} : vector<8x384xf32> to vector<8x64xf32>
    %266 = arith.addf %264, %265 : vector<8x64xf32>
    %267 = arith.negf %266 : vector<8x64xf32>
    %268 = math.exp %267 : vector<8x64xf32>
    %cst_155 = arith.constant 1.000000e+00 : f32
    %269 = vector.broadcast %cst_155 : f32 to vector<8x64xf32>
    %270 = arith.addf %269, %268 : vector<8x64xf32>
    %271 = arith.divf %269, %270 : vector<8x64xf32>
    %272 = vector.extract_strided_slice %261 {offsets = [0, 128], sizes = [8, 64], strides = [1, 1]} : vector<8x384xf32> to vector<8x64xf32>
    %273 = vector.extract_strided_slice %263 {offsets = [0, 128], sizes = [8, 64], strides = [1, 1]} : vector<8x384xf32> to vector<8x64xf32>
    %274 = arith.addf %272, %273 : vector<8x64xf32>
    %275 = arith.negf %274 : vector<8x64xf32>
    %276 = math.exp %275 : vector<8x64xf32>
    %cst_156 = arith.constant 1.000000e+00 : f32
    %277 = vector.broadcast %cst_156 : f32 to vector<8x64xf32>
    %278 = arith.addf %277, %276 : vector<8x64xf32>
    %279 = arith.divf %277, %278 : vector<8x64xf32>
    %280 = vector.extract_strided_slice %261 {offsets = [0, 256], sizes = [8, 64], strides = [1, 1]} : vector<8x384xf32> to vector<8x64xf32>
    %281 = vector.extract_strided_slice %263 {offsets = [0, 256], sizes = [8, 64], strides = [1, 1]} : vector<8x384xf32> to vector<8x64xf32>
    %282 = arith.addf %281, %109 : vector<8x64xf32>
    %283 = arith.mulf %271, %282 : vector<8x64xf32>
    %284 = arith.addf %280, %283 : vector<8x64xf32>
    %285 = math.tanh %284 : vector<8x64xf32>
    %cst_157 = arith.constant 1.000000e+00 : f32
    %286 = vector.broadcast %cst_157 : f32 to vector<8x64xf32>
    %287 = arith.subf %286, %279 : vector<8x64xf32>
    %288 = arith.mulf %287, %285 : vector<8x64xf32>
    %289 = arith.mulf %279, %260 : vector<8x64xf32>
    %290 = arith.addf %288, %289 : vector<8x64xf32>
    %c48_158 = arith.constant 48 : index
    %c0_159 = arith.constant 0 : index
    %291 = vector.load %arg10[%c48_158, %c0_159] : memref<64x384xf32, #tpu.memory_space<vmem>>, vector<8x384xf32>
    %292 = arith.truncf %290 : vector<8x64xf32> to vector<8x64xbf16>
    %cst_160 = arith.constant dense<0.000000e+00> : vector<8x384xf32>
    %293 = tpu.matmul %292, %106, %cst_160 {dimension_numbers = #tpu.dot_dimension_numbers<[1], [0], [0], [1], [0, 0, 1, 1], [], []>} : vector<8x64xbf16>, vector<64x384xbf16>, vector<8x384xf32> -> vector<8x384xf32>
    %294 = vector.extract_strided_slice %291 {offsets = [0, 0], sizes = [8, 64], strides = [1, 1]} : vector<8x384xf32> to vector<8x64xf32>
    %295 = vector.extract_strided_slice %293 {offsets = [0, 0], sizes = [8, 64], strides = [1, 1]} : vector<8x384xf32> to vector<8x64xf32>
    %296 = arith.addf %294, %295 : vector<8x64xf32>
    %297 = arith.negf %296 : vector<8x64xf32>
    %298 = math.exp %297 : vector<8x64xf32>
    %cst_161 = arith.constant 1.000000e+00 : f32
    %299 = vector.broadcast %cst_161 : f32 to vector<8x64xf32>
    %300 = arith.addf %299, %298 : vector<8x64xf32>
    %301 = arith.divf %299, %300 : vector<8x64xf32>
    %302 = vector.extract_strided_slice %291 {offsets = [0, 128], sizes = [8, 64], strides = [1, 1]} : vector<8x384xf32> to vector<8x64xf32>
    %303 = vector.extract_strided_slice %293 {offsets = [0, 128], sizes = [8, 64], strides = [1, 1]} : vector<8x384xf32> to vector<8x64xf32>
    %304 = arith.addf %302, %303 : vector<8x64xf32>
    %305 = arith.negf %304 : vector<8x64xf32>
    %306 = math.exp %305 : vector<8x64xf32>
    %cst_162 = arith.constant 1.000000e+00 : f32
    %307 = vector.broadcast %cst_162 : f32 to vector<8x64xf32>
    %308 = arith.addf %307, %306 : vector<8x64xf32>
    %309 = arith.divf %307, %308 : vector<8x64xf32>
    %310 = vector.extract_strided_slice %291 {offsets = [0, 256], sizes = [8, 64], strides = [1, 1]} : vector<8x384xf32> to vector<8x64xf32>
    %311 = vector.extract_strided_slice %293 {offsets = [0, 256], sizes = [8, 64], strides = [1, 1]} : vector<8x384xf32> to vector<8x64xf32>
    %312 = arith.addf %311, %109 : vector<8x64xf32>
    %313 = arith.mulf %301, %312 : vector<8x64xf32>
    %314 = arith.addf %310, %313 : vector<8x64xf32>
    %315 = math.tanh %314 : vector<8x64xf32>
    %cst_163 = arith.constant 1.000000e+00 : f32
    %316 = vector.broadcast %cst_163 : f32 to vector<8x64xf32>
    %317 = arith.subf %316, %309 : vector<8x64xf32>
    %318 = arith.mulf %317, %315 : vector<8x64xf32>
    %319 = arith.mulf %309, %290 : vector<8x64xf32>
    %320 = arith.addf %318, %319 : vector<8x64xf32>
    %c56_164 = arith.constant 56 : index
    %c0_165 = arith.constant 0 : index
    %321 = vector.load %arg10[%c56_164, %c0_165] : memref<64x384xf32, #tpu.memory_space<vmem>>, vector<8x384xf32>
    %322 = arith.truncf %320 : vector<8x64xf32> to vector<8x64xbf16>
    %cst_166 = arith.constant dense<0.000000e+00> : vector<8x384xf32>
    %323 = tpu.matmul %322, %106, %cst_166 {dimension_numbers = #tpu.dot_dimension_numbers<[1], [0], [0], [1], [0, 0, 1, 1], [], []>} : vector<8x64xbf16>, vector<64x384xbf16>, vector<8x384xf32> -> vector<8x384xf32>
    %324 = vector.extract_strided_slice %321 {offsets = [0, 0], sizes = [8, 64], strides = [1, 1]} : vector<8x384xf32> to vector<8x64xf32>
    %325 = vector.extract_strided_slice %323 {offsets = [0, 0], sizes = [8, 64], strides = [1, 1]} : vector<8x384xf32> to vector<8x64xf32>
    %326 = arith.addf %324, %325 : vector<8x64xf32>
    %327 = arith.negf %326 : vector<8x64xf32>
    %328 = math.exp %327 : vector<8x64xf32>
    %cst_167 = arith.constant 1.000000e+00 : f32
    %329 = vector.broadcast %cst_167 : f32 to vector<8x64xf32>
    %330 = arith.addf %329, %328 : vector<8x64xf32>
    %331 = arith.divf %329, %330 : vector<8x64xf32>
    %332 = vector.extract_strided_slice %321 {offsets = [0, 128], sizes = [8, 64], strides = [1, 1]} : vector<8x384xf32> to vector<8x64xf32>
    %333 = vector.extract_strided_slice %323 {offsets = [0, 128], sizes = [8, 64], strides = [1, 1]} : vector<8x384xf32> to vector<8x64xf32>
    %334 = arith.addf %332, %333 : vector<8x64xf32>
    %335 = arith.negf %334 : vector<8x64xf32>
    %336 = math.exp %335 : vector<8x64xf32>
    %cst_168 = arith.constant 1.000000e+00 : f32
    %337 = vector.broadcast %cst_168 : f32 to vector<8x64xf32>
    %338 = arith.addf %337, %336 : vector<8x64xf32>
    %339 = arith.divf %337, %338 : vector<8x64xf32>
    %340 = vector.extract_strided_slice %321 {offsets = [0, 256], sizes = [8, 64], strides = [1, 1]} : vector<8x384xf32> to vector<8x64xf32>
    %341 = vector.extract_strided_slice %323 {offsets = [0, 256], sizes = [8, 64], strides = [1, 1]} : vector<8x384xf32> to vector<8x64xf32>
    %342 = arith.addf %341, %109 : vector<8x64xf32>
    %343 = arith.mulf %331, %342 : vector<8x64xf32>
    %344 = arith.addf %340, %343 : vector<8x64xf32>
    %345 = math.tanh %344 : vector<8x64xf32>
    %cst_169 = arith.constant 1.000000e+00 : f32
    %346 = vector.broadcast %cst_169 : f32 to vector<8x64xf32>
    %347 = arith.subf %346, %339 : vector<8x64xf32>
    %348 = arith.mulf %347, %345 : vector<8x64xf32>
    %349 = arith.mulf %339, %320 : vector<8x64xf32>
    %350 = arith.addf %348, %349 : vector<8x64xf32>
    %c0_170 = arith.constant 0 : index
    %c0_171 = arith.constant 0 : index
    %351 = vector.load %arg6[%c0_170, %c0_171] : memref<64x4xf32, #tpu.memory_space<vmem>>, vector<64x4xf32>
    %cst_172 = arith.constant dense<0.000000e+00> : vector<8x4xf32>
    %352 = tpu.matmul %350, %351, %cst_172 {dimension_numbers = #tpu.dot_dimension_numbers<[1], [0], [0], [1], [0, 0, 1, 1], [], []>} : vector<8x64xf32>, vector<64x4xf32>, vector<8x4xf32> -> vector<8x4xf32>
    %c0_173 = arith.constant 0 : index
    %c0_174 = arith.constant 0 : index
    %353 = vector.load %arg7[%c0_173, %c0_174] : memref<1x4xf32, #tpu.memory_space<vmem>>, vector<1x4xf32>
    %354 = vector.broadcast %353 : vector<1x4xf32> to vector<8x4xf32>
    %355 = arith.addf %352, %354 : vector<8x4xf32>
    %356 = vector.extract_strided_slice %355 {offsets = [0, 0], sizes = [2, 4], strides = [1, 1]} : vector<8x4xf32> to vector<2x4xf32>
    %c0_175 = arith.constant 0 : index
    %c0_176 = arith.constant 0 : index
    %357 = vector.load %arg8[%c0_175, %c0_176] : memref<2x4xf32, #tpu.memory_space<vmem>>, vector<2x4xf32>
    tpu.vector_store %arg8[%c0_175, %c0_176], %356 {strides = array<i32>} : memref<2x4xf32, #tpu.memory_space<vmem>>, vector<2x4xf32>,
    return
  }
}

</mosaic_0001>

<bundles_post_ra>
// kernel: bertgru_forward.1
= control target key start
LH: loop header
LB: loop body
LE: loop exit
PB: predicated region body
PF: predicated region fallthrough
CT: control target
= control target key end

     0   :  { %13 = vsyncpa [#allocation6], 0  ;;  %s2728_s0 = inlined_call_operand.vmem [shape: s32[2,8], index: 0, kind: input, shape index: {}]   ;;  %s2729_s1 = inlined_call_operand.vmem [shape: f32[100,1,32], index: 1, kind: input, shape index: {}]   ;;  %s2730_s2 = inlined_call_operand.vmem [shape: bf16[64,384], index: 2, kind: input, shape index: {}]   ;;  %s2731_s3 = inlined_call_operand.vmem [shape: f32[1,384], index: 3, kind: input, shape index: {}]   ;;  %s2732_s4 = inlined_call_operand.vmem [shape: bf16[64,384], index: 4, kind: input, shape index: {}]   ;;  %s2733_s5 = inlined_call_operand.vmem [shape: f32[1,64], index: 5, kind: input, shape index: {}]   ;;  %s2734_s6 = inlined_call_operand.vmem [shape: f32[64,4], index: 6, kind: input, shape index: {}]   ;;  %s2735_s7 = inlined_call_operand.vmem [shape: f32[1,4], index: 7, kind: input, shape index: {}]   ;;  %s2736_s8 = inlined_call_operand.hbm [shape: f32[2,4], index: 8, kind: output, shape index: {}]  }
   0x1   :  { %14 = vsyncpa [#allocation5], 0  ;;  %s21_s29 = sshll.u32 %s2728_s0, 4  ;;  %s22_s29 = int_to_ptr.vmem [resolvable:$true] %s21_s29 }
   0x2   :  { %s2019_s30 = scalar_lea.vmem %s22_s29, 32  ;;  %p2024_p1 = scmp.lt.s32.totalorder %s22_s29, %s22_s29 }
   0x3   :  { %p2020_p0 = scmp.ne.s32.totalorder %s22_s29, %s2019_s30  ;;  %p2025_p2 = scmp.lt.s32.totalorder %s2019_s30, %s2019_s30 }
   0x5   :  { %p2026_p3 = por %p2025_p2, %p2024_p1 }
   0x7   :  { %p2027_p4 = pnand %p2026_p3, %p2020_p0 }
   0x9   :  { %2030 = shalt.err (!%p2027_p4)
}
   0xa   :  { %s2055_s9 = smov [#allocation4]  }
   0xb   :  { %24 = dma.vmem_to_smem %s22_s29, 32, %s2055_s9, [#allocation6]  }
   0xc   :  { %2051 = dma.done.wait [#allocation6], 32  }
   0xd   :  { %2052 = vsyncadd [#allocation6], 4294967264 }
   0xe   :  { %42 = sfence }
   0xf   :  { %v59_v0 = vlaneseq  ;;  %s1646_s10 = sld [smem:[#allocation4 + $0x7]]  ;;  %v1907_v1 = vld [vmem:[%s2730_s2 + $0x4c] ss:$12 sps:$4 sm:$0xff]   ;;  %v1909_v2 = vld [vmem:[%s2730_s2 + $0x48] ss:$12 sps:$4 sm:$0xff]   ;;  %vm44_vm0 = vcmask 523264  }
  0x10   :  { %s2109_s11 = sld [smem:[#allocation4 + $0x6]]  ;;  %392 = vmatprep.subr.bf16.mxu0 %v1907_v1  ;;  %v2056_v4 = vmov 0.0   ;;  %v1910_v5 = vld [vmem:[%s2730_s2 + $0x34] ss:$12 sps:$4 sm:$0xff]   ;;  %v1912_v7 = vld [vmem:[%s2730_s2 + $0x30] ss:$12 sps:$4 sm:$0xff]  }
  0x11   :  { %v2117_v3 = vshrl.u32 %v59_v0, 7  ;;  %s2119_s15 = sld [smem:[#allocation4 + $0x87]]  ;;  %45 = vst.msk [vmem:[#allocation2] sm:$0xff] %vm44_vm0, %v2056_v4  ;;  %46 = vst.msk [vmem:[#allocation2 + $0x8] sm:$0xff] %vm44_vm0, %v2056_v4  ;;  %393 = vmatpush1.bf16.msra.mxu0 %v1909_v2  ;;  %v1913_v8 = vld [vmem:[%s2730_s2 + $0x1c] ss:$12 sps:$4 sm:$0xff]  }
  0x12   :  { %s2121_s16 = sld [smem:[#allocation4 + $0x86]]  ;;  %47 = vst.msk [vmem:[#allocation2 + $0x10] sm:$0xff] %vm44_vm0, %v2056_v4  ;;  %48 = vst.msk [vmem:[#allocation2 + $0x18] sm:$0xff] %vm44_vm0, %v2056_v4  ;;  %394 = vmatprep.subr.bf16.mxu0 %v1910_v5  ;;  %vm56_vm1 = vcmask 253952   ;;  %v1915_v10 = vld [vmem:[%s2730_s2 + $0x50] ss:$12 sps:$4 sm:$0xff]  }
  0x13   :  { %49 = vst.msk [vmem:[#allocation2 + $0x20] sm:$0xff] %vm44_vm0, %v2056_v4  ;;  %50 = vst.msk [vmem:[#allocation2 + $0x28] sm:$0xff] %vm44_vm0, %v2056_v4  ;;  %v2143_v6 = vsub.s32 0, %v2117_v3  ;;  %s2145_s19 = sld [smem:[#allocation4 + $0x84]]  ;;  %v1916_v13 = vld [vmem:[%s2730_s2 + $0x18] ss:$12 sps:$4 sm:$0xff]   ;;  %1770 = vmatprep.subr.bf16.mxu1 %v1915_v10 }
  0x14   :  { %51 = vst.msk [vmem:[#allocation2 + $0x30] sm:$0xff] %vm44_vm0, %v2056_v4  ;;  %52 = vst.msk [vmem:[#allocation2 + $0x38] sm:$0xff] %vm44_vm0, %v2056_v4  ;;  %s2150_s22 = sld [smem:[#allocation4 + $0x4]]  ;;  %1771 = vmatpush3.bf16.msra.mxu1 %v1915_v10  ;;  %v1917_v18 = vld [vmem:[%s2730_s2 + $0x4] ss:$12 sps:$4 sm:$0xff]   ;;  %v2058_v31 = vmov 0  }
  0x15   :  { %s238_s27 = scalar_lea.vmem %s2729_s1, %s1646_s10  ;;  %s2158_s28 = sld [smem:[#allocation4 + $0x85]]  ;;  %395 = vmatpush1.bf16.msra.mxu0 %v1912_v7  ;;  %v1919_v23 = vld [vmem:[%s2730_s2 + $0x38] ss:$12 sps:$4 sm:$0xff]   ;;  %v1920_v26 = vld [vmem:[%s2730_s2] ss:$12 sps:$4 sm:$0xff]   ;;  %416 = vmatprep.mubr.bf16.mxu0 %v2058_v31  ;;  %vm66_vm2 = vcmask 516352  }
  0x16   :  { %v2160_v9 = vld [vmem:[%s238_s27] sm:$0x1]  ;;  %s212_s9 = scalar_lea.vmem %s2729_s1, %s2109_s11  ;;  %s2166_s12 = sld [smem:[#allocation4 + $0x5]]  ;;  %396 = vmatprep.subr.bf16.mxu0 %v1913_v8  ;;  %1772 = vmatprep.subr.bf16.mxu1 %v1919_v23  ;;  %v1922_v35 = vld [vmem:[%s2730_s2 + $0x8] ss:$12 sps:$4 sm:$0xff]   ;;  %vm2059_vm3 = vmmov 0  }
  0x17   :  { %v245_v11 = vrot.slane %v2160_v9, %v2143_v6  ;;  %v2173_v12 = vld [vmem:[%s212_s9] sm:$0x1]  ;;  %s251_s17 = scalar_lea.vmem %s2729_s1, %s2119_s15  ;;  %s2179_s18 = sld [smem:[#allocation4 + $0x82]]  ;;  %v2318_v45 = vld [vmem:[%s2732_s4 + $0x4c] ss:$12 sps:$4 sm:$0xff]   ;;  %vm1600_vm4 = vcmask 25600  }
  0x18   :  { %v219_v14 = vrot.slane %v2173_v12, %v2143_v6  ;;  %v2186_v15 = vld [vmem:[%s251_s17] sm:$0x1]  ;;  %s225_s24 = scalar_lea.vmem %s2729_s1, %s2121_s16  ;;  %s2192_s25 = sld [smem:[#allocation4 + $0x2]]  ;;  %1773 = vmatpush3.bf16.msra.mxu1 %v1919_v23  ;;  %v2341_v60 = vld [vmem:[%s2732_s4 + $0x50] ss:$12 sps:$4 sm:$0xff]  }
  0x19   :  { %s2057_s15 = smov 32   ;;  %v258_v16 = vrot.slane %v2186_v15, %v2143_v6  ;;  %v2197_v17 = vld [vmem:[%s225_s24] sm:$0x1]  ;;  %s173_s29 = scalar_lea.vmem %s2729_s1, %s2145_s19  ;;  %397 = vmatpush1.bf16.msra.mxu0 %v1916_v13  ;;  %v2352_v0 = vld [vmem:[%s2732_s4 + $0x38] ss:$12 sps:$4 sm:$0xff]  }
  0x1a   :  { %246 = vrot.lane.b32.xlu1 %v245_v11, %s2057_s15  ;;  %s2203_s30 = sld [smem:[#allocation4 + $0x83]]  ;;  %220 = vrot.lane.b32.xlu0 %v219_v14, %s2057_s15  ;;  %v232_v19 = vrot.slane %v2197_v17, %v2143_v6  ;;  %v2211_v20 = vld [vmem:[%s173_s29] sm:$0x1]  ;;  %s160_s10 = scalar_lea.vmem %s2729_s1, %s2150_s22  ;;  %v2364_v8 = vld [vmem:[%s2732_s4 + $0x48] ss:$12 sps:$4 sm:$0xff]  }
  0x1b   :  { %s2217_s19 = sld [smem:[#allocation4 + $0x3]]  ;;  %v2219_v21 = vld [vmem:[%s160_s10] sm:$0x1]  ;;  %s199_s11 = scalar_lea.vmem %s2729_s1, %s2158_s28  ;;  %398 = vmatprep.subr.bf16.mxu0 %v1917_v18  ;;  %v180_v24 = vrot.slane %v2211_v20, %v2143_v6  ;;  %v2390_v18 = vld [vmem:[%s2732_s4 + $0x30] ss:$12 sps:$4 sm:$0xff]  }
  0x1c   :  { %s2225_s20 = sld [smem:[#allocation4 + $0x80]]  ;;  %v2227_v22 = vld [vmem:[%s199_s11] sm:$0x1]  ;;  %s186_s24 = scalar_lea.vmem %s2729_s1, %s2166_s12  ;;  %v167_v27 = vrot.slane %v2219_v21, %v2143_v6  ;;  %v2416_v23 = vld [vmem:[%s2732_s4 + $0x18] ss:$12 sps:$4 sm:$0xff]  }
  0x1d   :  { %s2233_s26 = sld [smem:[#allocation4]]  ;;  %v2241_v25 = vld [vmem:[%s186_s24] sm:$0x1]  ;;  %s121_s12 = scalar_lea.vmem %s2729_s1, %s2179_s18  ;;  %399 = vmatpush1.bf16.msra.mxu0 %v1920_v26  ;;  %v206_v33 = vrot.slane %v2227_v22, %v2143_v6 }
  0x1e   :  { %259 = vrot.lane.b32.xlu1 %v258_v16, %s2057_s15  ;;  %s2247_s16 = sld [smem:[#allocation4 + $0x81]]  ;;  %233 = vrot.lane.b32.xlu0 %v232_v19, %s2057_s15  ;;  %v122_v28 = vld [vmem:[%s121_s12] sm:$0x1]  ;;  %s108_s14 = scalar_lea.vmem %s2729_s1, %s2192_s25  ;;  %v193_v36 = vrot.slane %v2241_v25, %v2143_v6  ;;  %v2400_v19 = vld [vmem:[%s2732_s4 + $0x1c] ss:$12 sps:$4 sm:$0xff]  }
  0x1f   :  { %s2259_s17 = sld [smem:[#allocation4 + $0x1]]  ;;  %v109_v29 = vld [vmem:[%s108_s14] sm:$0x1]  ;;  %123 = vst.msk [vmem:[#allocation2 + $0x11] sm:$0x1] %vm56_vm1, %v122_v28  ;;  %1786 = vmatprep.subr.bf16.mxu0 %v2056_v4  ;;  %v128_v40 = vrot.slane %v122_v28, %v2143_v6  ;;  %s2060_s13 = smov [#allocation7]  }
  0x20   :  { %s147_s21 = scalar_lea.vmem %s2729_s1, %s2203_s30  ;;  %110 = vst.msk [vmem:[#allocation2 + $0x10] sm:$0x1] %vm56_vm1, %v109_v29  ;;  %v1921_v32 = vld [vmem:[%s2730_s2 + $0x20] ss:$12 sps:$4 sm:$0xff]   ;;  %v115_v42 = vrot.slane %v109_v29, %v2143_v6 }
  0x21   :  { %v148_v30 = vld [vmem:[%s147_s21] sm:$0x1]  ;;  %s134_s22 = scalar_lea.vmem %s2729_s1, %s2217_s19  ;;  %1774 = vmatprep.subr.bf16.mxu1 %v1921_v32 }
  0x22   :  { %181 = vrot.lane.b32.xlu1 %v180_v24, %s2057_s15  ;;  %v135_v34 = vld [vmem:[%s134_s22] sm:$0x1]  ;;  %s69_s28 = scalar_lea.vmem %s2729_s1, %s2225_s20  ;;  %149 = vst.msk [vmem:[#allocation2 + $0x19] sm:$0x1] %vm56_vm1, %v148_v30  ;;  %168 = vrot.lane.b32.xlu0 %v167_v27, %s2057_s15  ;;  %v154_v43 = vrot.slane %v148_v30, %v2143_v6  ;;  %v2425_v24 = vld [vmem:[%s2732_s4 + $0x4] ss:$12 sps:$4 sm:$0xff]  }
  0x23   :  { %v70_v37 = vld [vmem:[%s69_s28] sm:$0x1]  ;;  %s54_s0 = scalar_lea.vmem %s2729_s1, %s2233_s26  ;;  %136 = vst.msk [vmem:[#allocation2 + $0x18] sm:$0x1] %vm56_vm1, %v135_v34  ;;  %1775 = vmatpush3.bf16.msra.mxu1 %v1921_v32  ;;  %v141_v44 = vrot.slane %v135_v34, %v2143_v6  ;;  %v299_v30 = vsub.s32 1, %v2117_v3  ;;  %v303_v32 = vsub.s32 2, %v2117_v3 }
  0x24   :  { %v55_v38 = vld [vmem:[%s54_s0] sm:$0x1]  ;;  %s95_s14 = scalar_lea.vmem %s2729_s1, %s2247_s16  ;;  %71 = vst.msk [vmem:[#allocation2 + $0x1] sm:$0x1] %vm56_vm1, %v70_v37  ;;  %1776 = vmatprep.subr.bf16.mxu1 %v1922_v35  ;;  %v76_v46 = vrot.slane %v70_v37, %v2143_v6  ;;  %s1608_s0 = sshll.u32 %s2060_s13, 4  ;;  %s1609_s0 = int_to_ptr.vmem [resolvable:$true] %s1608_s0 }
  0x25   :  { %v96_v39 = vld [vmem:[%s95_s14] sm:$0x1]  ;;  %s82_s11 = scalar_lea.vmem %s2729_s1, %s2259_s17  ;;  %57 = vst.msk [vmem:[#allocation2] sm:$0x1] %vm56_vm1, %v55_v38  ;;  %v62_v47 = vrot.slane %v55_v38, %v2143_v6  ;;  %s2031_s20 = scalar_lea.vmem %s1609_s0, 32 }
  0x26   :  { %207 = vrot.lane.b32.xlu1 %v206_v33, %s2057_s15  ;;  %v83_v41 = vld [vmem:[%s82_s11] sm:$0x1]  ;;  %97 = vst.msk [vmem:[#allocation2 + $0x9] sm:$0x1] %vm56_vm1, %v96_v39  ;;  %194 = vrot.lane.b32.xlu0 %v193_v36, %s2057_s15  ;;  %v102_v48 = vrot.slane %v96_v39, %v2143_v6  ;;  %p2032_p5 = scmp.ne.s32.totalorder %s1609_s0, %s2031_s20  ;;  %p2036_p6 = scmp.lt.s32.totalorder %s1609_s0, %s1609_s0 }
  0x27   :  { %84 = vst.msk [vmem:[#allocation2 + $0x8] sm:$0x1] %vm56_vm1, %v83_v41  ;;  %1777 = vmatpush3.bf16.msra.mxu1 %v1922_v35  ;;  %v89_v49 = vrot.slane %v83_v41, %v2143_v6  ;;  %v2373_v11 = vld [vmem:[%s2732_s4 + $0x34] ss:$12 sps:$4 sm:$0xff]   ;;  %p2037_p7 = scmp.lt.s32.totalorder %s2031_s20, %s2031_s20 }
  0x28   :  { %647 = vmatprep.subr.bf16.mxu1 %v2318_v45  ;;  %v2379_v13 = vld [vmem:[%s2732_s4 + $0x20] ss:$12 sps:$4 sm:$0xff]  }
  0x29   :  { %v291_v28 = vld [vmem:[%s2731_s3] sm:$0x7]  ;;  %p2038_p8 = por %p2037_p7, %p2036_p6 }
  0x2a   :  { %129 = vrot.lane.b32.xlu1 %v128_v40, %s2057_s15  ;;  %116 = vrot.lane.b32.xlu0 %v115_v42, %s2057_s15  ;;  %v296_v34 = vrot.slane %v291_v28, %v2143_v6  ;;  %v300_v36 = vrot.slane %v291_v28, %v299_v30  ;;  %v2477_v38 = vrot.slane %v291_v28, %v303_v32 }
  0x2b   :  { %p2039_p9 = pnand %p2038_p8, %p2032_p5 }
  0x2e   :  { %155 = vrot.lane.b32.xlu1 %v154_v43, %s2057_s15  ;;  %142 = vrot.lane.b32.xlu0 %v141_v44, %s2057_s15 }
  0x32   :  { %77 = vrot.lane.b32.xlu1 %v76_v46, %s2057_s15  ;;  %63 = vrot.lane.b32.xlu0 %v62_v47, %s2057_s15 }
  0x36   :  { %103 = vrot.lane.b32.xlu1 %v102_v48, %s2057_s15  ;;  %90 = vrot.lane.b32.xlu0 %v89_v49, %s2057_s15 }
  0x8c   :  { %v247_v50 = vpop.permute.xlu1 %246  ;;  %v221_v51 = vpop.permute.xlu0 %220 }
  0x8d   :  { %249 = vst.msk [vmem:[#allocation2] sm:$0x1] %vm66_vm2, %v247_v50  ;;  %223 = vst.msk [vmem:[#allocation2 + $0x8] sm:$0x1] %vm66_vm2, %v221_v51 }
  0x90   :  { %v260_v52 = vpop.permute.xlu1 %259  ;;  %v234_v53 = vpop.permute.xlu0 %233 }
  0x91   :  { %262 = vst.msk [vmem:[#allocation2 + $0x1] sm:$0x1] %vm66_vm2, %v260_v52  ;;  %236 = vst.msk [vmem:[#allocation2 + $0x9] sm:$0x1] %vm66_vm2, %v234_v53 }
  0x94   :  { %v182_v54 = vpop.permute.xlu1 %181  ;;  %v169_v55 = vpop.permute.xlu0 %168 }
  0x95   :  { %184 = vst.msk [vmem:[#allocation2 + $0x19] sm:$0x1] %vm66_vm2, %v182_v54  ;;  %171 = vst.msk [vmem:[#allocation2 + $0x18] sm:$0x1] %vm66_vm2, %v169_v55 }
  0x98   :  { %v208_v56 = vpop.permute.xlu1 %207  ;;  %v263_v57 = vld [vmem:[#allocation2] sm:$0xff]  ;;  %v195_v58 = vpop.permute.xlu0 %194  ;;  %v264_v59 = vld [vmem:[#allocation2 + $0x8] sm:$0xff] }
  0x99   :  { %210 = vst.msk [vmem:[#allocation2 + $0x11] sm:$0x1] %vm66_vm2, %v208_v56  ;;  %197 = vst.msk [vmem:[#allocation2 + $0x10] sm:$0x1] %vm66_vm2, %v195_v58  ;;  %v271_v61 = vpack.c.bf16 %v264_v59, %v263_v57 }
  0x9b   :  { %1660 = vmatmul.mubr.msk.bf16.vlgmr.msra.gmra.mxu0 %vm44_vm0, %v271_v61  ;;  %1778 = vmatprep.mubr.msk.bf16.mxu1 %vm44_vm0, %v271_v61 }
  0x9c   :  { %v130_v62 = vpop.permute.xlu1 %129  ;;  %v117_v63 = vpop.permute.xlu0 %116  ;;  %426 = vmatprep.mubr.bf16.mxu0 %v2058_v31  ;;  %1787 = vmatpush3.bf16.msra.mxu0 %v2341_v60  ;;  %v266_v7 = vld [vmem:[#allocation2 + $0x18] sm:$0xff] }
  0x9d   :  { %132 = vst.msk [vmem:[#allocation2 + $0x29] sm:$0x1] %vm66_vm2, %v130_v62  ;;  %119 = vst.msk [vmem:[#allocation2 + $0x28] sm:$0x1] %vm66_vm2, %v117_v63  ;;  %1788 = vmatprep.subr.bf16.mxu0 %v2056_v4 }
  0x9e   :  { %201 = vst.msk [vmem:[#allocation2 + $0x29] sm:$0x1] %vm56_vm1, %v2227_v22  ;;  %188 = vst.msk [vmem:[#allocation2 + $0x28] sm:$0x1] %vm56_vm1, %v2241_v25 }
  0xa0   :  { %v156_v1 = vpop.permute.xlu1 %155  ;;  %v143_v2 = vpop.permute.xlu0 %142  ;;  %v265_v5 = vld [vmem:[#allocation2 + $0x10] sm:$0xff]  ;;  %1789 = vmatpush3.bf16.msra.mxu0 %v2352_v0 }
  0xa1   :  { %158 = vst.msk [vmem:[#allocation2 + $0x21] sm:$0x1] %vm66_vm2, %v156_v1  ;;  %145 = vst.msk [vmem:[#allocation2 + $0x20] sm:$0x1] %vm66_vm2, %v143_v2  ;;  %v272_v10 = vpack.c.bf16 %v266_v7, %v265_v5  ;;  %1790 = vmatprep.subr.bf16.mxu0 %v2056_v4 }
  0xa2   :  { %175 = vst.msk [vmem:[#allocation2 + $0x21] sm:$0x1] %vm56_vm1, %v2211_v20  ;;  %162 = vst.msk [vmem:[#allocation2 + $0x20] sm:$0x1] %vm56_vm1, %v2219_v21  ;;  %v2406_v20 = vld [vmem:[%s2732_s4 + $0x8] ss:$12 sps:$4 sm:$0xff]  }
  0xa3   :  { %1661 = vmatmul.mubr.msk.bf16.gmra.mxu0 %vm44_vm0, %v272_v10  ;;  %1779 = vmatmul.mubr.msk.bf16.vlgmr.msra.gmra.mxu1 %vm44_vm0, %v272_v10 }
  0xa4   :  { %v78_v14 = vpop.permute.xlu1 %77  ;;  %v64_v16 = vpop.permute.xlu0 %63  ;;  %648 = vmatpush1.bf16.msra.mxu1 %v2364_v8  ;;  %436 = vmatprep.mubr.bf16.mxu0 %v2058_v31 }
  0xa5   :  { %80 = vst.msk [vmem:[#allocation2 + $0x39] sm:$0x1] %vm66_vm2, %v78_v14  ;;  %67 = vst.msk [vmem:[#allocation2 + $0x38] sm:$0x1] %vm66_vm2, %v64_v16  ;;  %649 = vmatprep.subr.bf16.mxu1 %v2373_v11  ;;  %1791 = vmatpush3.bf16.msra.mxu0 %v2379_v13  ;;  %v268_v21 = vld [vmem:[#allocation2 + $0x28] sm:$0xff] }
  0xa6   :  { %253 = vst.msk [vmem:[#allocation2 + $0x39] sm:$0x1] %vm56_vm1, %v2186_v15  ;;  %240 = vst.msk [vmem:[#allocation2 + $0x38] sm:$0x1] %vm56_vm1, %v2160_v9  ;;  %1792 = vmatprep.subr.bf16.mxu0 %v2056_v4 }
  0xa8   :  { %v104_v15 = vpop.permute.xlu1 %103  ;;  %v91_v22 = vpop.permute.xlu0 %90  ;;  %650 = vmatpush1.bf16.msra.mxu1 %v2390_v18 }
  0xa9   :  { %106 = vst.msk [vmem:[#allocation2 + $0x31] sm:$0x1] %vm66_vm2, %v104_v15  ;;  %93 = vst.msk [vmem:[#allocation2 + $0x30] sm:$0x1] %vm66_vm2, %v91_v22  ;;  %v267_v9 = vld [vmem:[#allocation2 + $0x20] sm:$0xff]  ;;  %651 = vmatprep.subr.bf16.mxu1 %v2400_v19  ;;  %1793 = vmatpush3.bf16.msra.mxu0 %v2406_v20 }
  0xaa   :  { %227 = vst.msk [vmem:[#allocation2 + $0x31] sm:$0x1] %vm56_vm1, %v2197_v17  ;;  %214 = vst.msk [vmem:[#allocation2 + $0x30] sm:$0x1] %vm56_vm1, %v2173_v12  ;;  %v273_v25 = vpack.c.bf16 %v268_v21, %v267_v9  ;;  %1798 = vmatprep.subr.bf16.mxu0 %v2056_v4  ;;  %v2436_v17 = vld [vmem:[%s2732_s4] ss:$12 sps:$4 sm:$0xff]  }
  0xac   :  { %1782 = vmatprep.mubr.msk.bf16.mxu1 %vm44_vm0, %v273_v25  ;;  %652 = vmatpush1.bf16.msra.mxu1 %v2416_v23 }
  0xad   :  { %653 = vmatprep.subr.bf16.mxu1 %v2425_v24  ;;  %1662 = vmatmul.mubr.msk.bf16.gmra.mxu0 %vm44_vm0, %v273_v25  ;;  %v270_v26 = vld [vmem:[#allocation2 + $0x38] sm:$0xff] }
  0xae   :  { %446 = vmatprep.mubr.bf16.mxu0 %v2058_v31 }
  0xb0   :  { %654 = vmatpush1.bf16.msra.mxu1 %v2436_v17 }
  0xb1   :  { %v269_v12 = vld [vmem:[#allocation2 + $0x30] sm:$0xff]  ;;  %757 = vmatprep.subr.bf16.mxu1 %v2318_v45 }
  0xb2   :  { %v274_v27 = vpack.c.bf16 %v270_v26, %v269_v12 }
  0xb4   :  { %1783 = vmatmul.mubr.msk.bf16.gmra.mxu1 %vm44_vm0, %v274_v27 }
  0xb5   :  { %671 = vmatprep.mubr.bf16.mxu1 %v2058_v31  ;;  %1663 = vmatmul.mubr.msk.bf16.gmra.mxu0 %vm44_vm0, %v274_v27 }
  0xb6   :  { %1794 = vmatprep.mubr.msk.bf16.mxu0 %vm2059_vm3, %v2056_v4 }
  0xbc   :  { %672 = vmatmul.mubr.bf16.vlgmr.msra.gmra.mxu1 %v2058_v31 }
  0xbd   :  { %1795 = vmatmul.mubr.bf16.vlgmr.msra.gmra.mxu0 %v2058_v31  ;;  %758 = vmatpush1.bf16.msra.mxu1 %v2364_v8 }
  0xbe   :  { %1799 = vmatpush3.bf16.msra.mxu0 %v2341_v60  ;;  %759 = vmatprep.subr.bf16.mxu1 %v2373_v11 }
  0xbf   :  { %1800 = vmatprep.subr.bf16.mxu0 %v2056_v4  ;;  %781 = vmatprep.mubr.bf16.mxu1 %v2058_v31 }
  0xc0   :  { %1806 = vmatprep.mubr.msk.bf16.mxu0 %vm2059_vm3, %v2056_v4 }
  0xc1   :  { %760 = vmatpush1.bf16.msra.mxu1 %v2390_v18 }
  0xc2   :  { %1801 = vmatpush3.bf16.msra.mxu0 %v2352_v0  ;;  %761 = vmatprep.subr.bf16.mxu1 %v2400_v19 }
  0xc3   :  { %1802 = vmatprep.subr.bf16.mxu0 %v2056_v4 }
  0xc5   :  { %762 = vmatpush1.bf16.msra.mxu1 %v2416_v23 }
  0xc6   :  { %1803 = vmatpush3.bf16.msra.mxu0 %v2379_v13  ;;  %763 = vmatprep.subr.bf16.mxu1 %v2425_v24 }
  0xc7   :  { %1804 = vmatprep.subr.bf16.mxu0 %v2056_v4 }
  0xc9   :  { %764 = vmatpush1.bf16.msra.mxu1 %v2436_v17 }
  0xca   :  { %1805 = vmatpush3.bf16.msra.mxu0 %v2406_v20  ;;  %867 = vmatprep.subr.bf16.mxu1 %v2318_v45 }
  0xcb   :  { %1810 = vmatprep.subr.bf16.mxu0 %v2056_v4 }
 0x15b   :  { %v418_v29 = vpop.f32.mrf.mxu0 }
 0x15c   :  { %v419_v12 = vadd.f32 %v418_v29, %v296_v34 }
 0x15d   :  { %v420_v33 = vpop.f32.mrf.mxu0 }
 0x15f   :  { %v422_v35 = vpop.f32.mrf.mxu0 }
 0x160   :  { %v2475_v37 = vadd.f32 %v422_v35, %v296_v34 }
 0x161   :  { %v424_v39 = vpop.f32.mrf.mxu0 }
 0x162   :  { %v2479_v40 = vadd.f32 %v424_v39, %v300_v36 }
 0x163   :  { %v428_v41 = vpop.f32.mrf.mxu0  ;;  %v1780_v42 = vpop.f32.mrf.mxu1 }
 0x164   :  { %v2481_v43 = vadd.f32 %v428_v41, %v296_v34  ;;  %v2484_v44 = vadd.f32 %v1780_v42, %v2477_v38 }
 0x165   :  { %v430_v3 = vpop.f32.mrf.mxu0  ;;  %v491_v46 = vpop.f32.mrf.mxu1 }
 0x166   :  { %v2486_v47 = vadd.f32 %v430_v3, %v300_v36 }
 0x167   :  { %v432_v6 = vpop.f32.mrf.mxu0  ;;  %v1781_v48 = vpop.f32.mrf.mxu1 }
 0x168   :  { %v2488_v49 = vadd.f32 %v432_v6, %v296_v34  ;;  %v2491_v50 = vadd.f32 %v1781_v48, %v2477_v38  ;;  %v421_v48 = vadd.f32 %v420_v33, %v300_v36 }
 0x169   :  { %v434_v51 = vpop.f32.mrf.mxu0  ;;  %v494_v52 = vpop.f32.mrf.mxu1 }
 0x16a   :  { %v2493_v53 = vadd.f32 %v434_v51, %v300_v36  ;;  %v2496_v54 = vadd.f32 %v494_v52, %v2477_v38 }
 0x16d   :  { %v438_v55 = vpop.f32.mrf.mxu0 }
 0x16e   :  { %v2498_v56 = vadd.f32 %v438_v55, %v296_v34 }
 0x16f   :  { %v440_v57 = vpop.f32.mrf.mxu0 }
 0x170   :  { %v2500_v58 = vadd.f32 %v440_v57, %v300_v36 }
 0x171   :  { %v442_v59 = vpop.f32.mrf.mxu0 }
 0x172   :  { %v2502_v61 = vadd.f32 %v442_v59, %v296_v34 }
 0x173   :  { %v444_v62 = vpop.f32.mrf.mxu0 }
 0x174   :  { %v1784_v63 = vpop.f32.mrf.mxu1  ;;  %v2504_v1 = vadd.f32 %v444_v62, %v300_v36 }
 0x175   :  { %v2507_v2 = vadd.f32 %v1784_v63, %v2477_v38  ;;  %v448_v5 = vpop.f32.mrf.mxu0  ;;  %v2529_v63 = vld [vmem:[%s2733_s5] ss:$0 sm:$0xff] }
 0x176   :  { %v507_v7 = vpop.f32.mrf.mxu1  ;;  %v2509_v10 = vadd.f32 %v448_v5, %v296_v34 }
 0x177   :  { %v2512_v14 = vadd.f32 %v507_v7, %v2477_v38  ;;  %v450_v16 = vpop.f32.mrf.mxu0 }
 0x178   :  { %v1785_v15 = vpop.f32.mrf.mxu1  ;;  %v2514_v21 = vadd.f32 %v450_v16, %v300_v36 }
 0x179   :  { %v2517_v22 = vadd.f32 %v1785_v15, %v2477_v38  ;;  %v452_v9 = vpop.f32.mrf.mxu0 }
 0x17a   :  { %v510_v25 = vpop.f32.mrf.mxu1  ;;  %v2519_v26 = vadd.f32 %v452_v9, %v296_v34 }
 0x17b   :  { %v2522_v27 = vadd.f32 %v510_v25, %v2477_v38  ;;  %v454_v28 = vpop.f32.mrf.mxu0 }
 0x17c   :  { %v673_v30 = vpop.f32.mrf.mxu1  ;;  %v2524_v32 = vadd.f32 %v454_v28, %v300_v36  ;;  %v492_v36 = vadd.f32 %v491_v46, %v2477_v38 }
 0x17d   :  { %v720_v35 = vadd.f32 %v673_v30, %v419_v12  ;;  %v714_v39 = vpop.f32.mrf.mxu0 }
 0x17e   :  { %v675_v41 = vpop.f32.mrf.mxu1  ;;  %v734_v7 = vadd.f32 %v2529_v63, %v714_v39 }
 0x17f   :  { %v1681_v42 = vmul.f32 -1.442695, %v720_v35  ;;  %v1796_v3 = vpop.f32.mrf.mxu0  ;;  %v727_v55 = vadd.f32 %v675_v41, %v421_v48 }
 0x180   :  { %v677_v6 = vpop.f32.mrf.mxu1 }
 0x181   :  { %1939 = vpow2.f32 %v1681_v42  ;;  %v717_v51 = vpop.f32.mrf.mxu0  ;;  %v1682_v29 = vmul.f32 -1.442695, %v727_v55 }
 0x182   :  { %v678_v52 = vpop.f32.mrf.mxu1 }
 0x183   :  { %v1797_v57 = vpop.f32.mrf.mxu0  ;;  %1941 = vpow2.f32 %v1682_v29 }
 0x18e   :  { %v1940_v34 = vpop.eup %1939 }
 0x18f   :  { %v724_v59 = vadd.f32 1.0, %v1940_v34 }
 0x190   :  { %v1942_v62 = vpop.eup %1941 }
 0x191   :  { %1943 = vrcp.f32 %v724_v59  ;;  %v731_v5 = vadd.f32 1.0, %v1942_v62 }
 0x193   :  { %1945 = vrcp.f32 %v731_v5 }
 0x19e   :  { %v1944_v33 = vpop.eup %1943 }
 0x19f   :  { %v735_v16 = vmul.f32 %v1944_v33, %v734_v7 }
 0x1a0   :  { %v1946_v9 = vpop.eup %1945 }
 0x1a1   :  { %v736_v15 = vadd.f32 %v735_v16, %v492_v36  ;;  %v738_v25 = vsub.f32 1.0, %v1946_v9  ;;  %v740_v30 = vmul.f32 0.0, %v1946_v9 }
 0x1a3   :  { %1947 = vtanh.f32 %v736_v15 }
 0x1b0   :  { %v1948_v12 = vpop.eup %1947 }
 0x1b1   :  { %v739_v28 = vmul.f32 %v1948_v12, %v738_v25 }
 0x1b3   :  { %v741_v35 = vadd.f32 %v740_v30, %v739_v28 }
 0x1b5   :  { %v745_v41 = vpack.c.bf16 %v741_v35, %v741_v35 }
 0x1b7   :  { %1683 = vmatmul.mubr.msk.bf16.vlgmr.msra.gmra.mxu1 %vm44_vm0, %v745_v41  ;;  %1807 = vmatmul.mubr.msk.bf16.vlgmr.msra.gmra.mxu0 %vm44_vm0, %v745_v41 }
 0x1b8   :  { %868 = vmatpush1.bf16.msra.mxu1 %v2364_v8  ;;  %1811 = vmatpush3.bf16.msra.mxu0 %v2341_v60 }
 0x1b9   :  { %869 = vmatprep.subr.bf16.mxu1 %v2373_v11  ;;  %1812 = vmatprep.subr.bf16.mxu0 %v2056_v4 }
 0x1ba   :  { %891 = vmatprep.mubr.bf16.mxu1 %v2058_v31  ;;  %1818 = vmatprep.mubr.msk.bf16.mxu0 %vm2059_vm3, %v2056_v4 }
 0x1bc   :  { %870 = vmatpush1.bf16.msra.mxu1 %v2390_v18  ;;  %1813 = vmatpush3.bf16.msra.mxu0 %v2352_v0 }
 0x1bd   :  { %871 = vmatprep.subr.bf16.mxu1 %v2400_v19  ;;  %1814 = vmatprep.subr.bf16.mxu0 %v2056_v4 }
 0x1c0   :  { %872 = vmatpush1.bf16.msra.mxu1 %v2416_v23  ;;  %1815 = vmatpush3.bf16.msra.mxu0 %v2379_v13 }
 0x1c1   :  { %873 = vmatprep.subr.bf16.mxu1 %v2425_v24  ;;  %1816 = vmatprep.subr.bf16.mxu0 %v2056_v4 }
 0x1c4   :  { %874 = vmatpush1.bf16.msra.mxu1 %v2436_v17  ;;  %1817 = vmatpush3.bf16.msra.mxu0 %v2406_v20 }
 0x1c5   :  { %977 = vmatprep.subr.bf16.mxu1 %v2318_v45  ;;  %1822 = vmatprep.subr.bf16.mxu0 %v2056_v4 }
 0x277   :  { %v783_v38 = vpop.f32.mrf.mxu1  ;;  %v824_v46 = vpop.f32.mrf.mxu0 }
 0x278   :  { %v830_v39 = vadd.f32 %v783_v38, %v2475_v37  ;;  %v844_v7 = vadd.f32 %v2529_v63, %v824_v46 }
 0x279   :  { %v785_v42 = vpop.f32.mrf.mxu1  ;;  %v1808_v3 = vpop.f32.mrf.mxu0 }
 0x27a   :  { %v1685_v6 = vmul.f32 -1.442695, %v830_v39  ;;  %v837_v57 = vadd.f32 %v785_v42, %v2479_v40 }
 0x27b   :  { %v787_v48 = vpop.f32.mrf.mxu1  ;;  %v827_v51 = vpop.f32.mrf.mxu0 }
 0x27c   :  { %1949 = vpow2.f32 %v1685_v6  ;;  %v1686_v29 = vmul.f32 -1.442695, %v837_v57 }
 0x27d   :  { %v788_v52 = vpop.f32.mrf.mxu1  ;;  %v1809_v55 = vpop.f32.mrf.mxu0 }
 0x27e   :  { %1951 = vpow2.f32 %v1686_v29 }
 0x289   :  { %v1950_v34 = vpop.eup %1949 }
 0x28a   :  { %v834_v59 = vadd.f32 1.0, %v1950_v34 }
 0x28b   :  { %v1952_v62 = vpop.eup %1951 }
 0x28c   :  { %1953 = vrcp.f32 %v834_v59  ;;  %v841_v5 = vadd.f32 1.0, %v1952_v62 }
 0x28e   :  { %1955 = vrcp.f32 %v841_v5 }
 0x299   :  { %v1954_v37 = vpop.eup %1953 }
 0x29a   :  { %v845_v33 = vmul.f32 %v1954_v37, %v844_v7 }
 0x29b   :  { %v1956_v16 = vpop.eup %1955 }
 0x29c   :  { %v846_v36 = vadd.f32 %v845_v33, %v2496_v54  ;;  %v848_v15 = vsub.f32 1.0, %v1956_v16  ;;  %v850_v40 = vmul.f32 %v1956_v16, %v741_v35 }
 0x29e   :  { %1957 = vtanh.f32 %v846_v36 }
 0x2ab   :  { %v1958_v9 = vpop.eup %1957 }
 0x2ac   :  { %v849_v25 = vmul.f32 %v1958_v9, %v848_v15 }
 0x2ae   :  { %v851_v12 = vadd.f32 %v850_v40, %v849_v25 }
 0x2b0   :  { %v855_v28 = vpack.c.bf16 %v851_v12, %v851_v12 }
 0x2b2   :  { %1687 = vmatmul.mubr.msk.bf16.vlgmr.msra.gmra.mxu1 %vm44_vm0, %v855_v28  ;;  %1819 = vmatmul.mubr.msk.bf16.vlgmr.msra.gmra.mxu0 %vm44_vm0, %v855_v28 }
 0x2b3   :  { %978 = vmatpush1.bf16.msra.mxu1 %v2364_v8  ;;  %1823 = vmatpush3.bf16.msra.mxu0 %v2341_v60 }
 0x2b4   :  { %979 = vmatprep.subr.bf16.mxu1 %v2373_v11  ;;  %1824 = vmatprep.subr.bf16.mxu0 %v2056_v4 }
 0x2b5   :  { %1001 = vmatprep.mubr.bf16.mxu1 %v2058_v31  ;;  %1830 = vmatprep.mubr.msk.bf16.mxu0 %vm2059_vm3, %v2056_v4 }
 0x2b7   :  { %980 = vmatpush1.bf16.msra.mxu1 %v2390_v18  ;;  %1825 = vmatpush3.bf16.msra.mxu0 %v2352_v0 }
 0x2b8   :  { %981 = vmatprep.subr.bf16.mxu1 %v2400_v19  ;;  %1826 = vmatprep.subr.bf16.mxu0 %v2056_v4 }
 0x2bb   :  { %982 = vmatpush1.bf16.msra.mxu1 %v2416_v23  ;;  %1827 = vmatpush3.bf16.msra.mxu0 %v2379_v13 }
 0x2bc   :  { %983 = vmatprep.subr.bf16.mxu1 %v2425_v24  ;;  %1828 = vmatprep.subr.bf16.mxu0 %v2056_v4 }
 0x2bf   :  { %984 = vmatpush1.bf16.msra.mxu1 %v2436_v17  ;;  %1829 = vmatpush3.bf16.msra.mxu0 %v2406_v20 }
 0x2c0   :  { %1087 = vmatprep.subr.bf16.mxu1 %v2318_v45  ;;  %1834 = vmatprep.subr.bf16.mxu0 %v2056_v4 }
 0x372   :  { %v893_v54 = vpop.f32.mrf.mxu1  ;;  %v934_v30 = vpop.f32.mrf.mxu0 }
 0x373   :  { %v940_v35 = vadd.f32 %v893_v54, %v2481_v43  ;;  %v954_v34 = vadd.f32 %v2529_v63, %v934_v30 }
 0x374   :  { %v895_v41 = vpop.f32.mrf.mxu1  ;;  %v1820_v38 = vpop.f32.mrf.mxu0 }
 0x375   :  { %v1689_v46 = vmul.f32 -1.442695, %v940_v35  ;;  %v947_v48 = vadd.f32 %v895_v41, %v2486_v47 }
 0x376   :  { %v897_v39 = vpop.f32.mrf.mxu1  ;;  %v937_v42 = vpop.f32.mrf.mxu0 }
 0x377   :  { %1959 = vpow2.f32 %v1689_v46  ;;  %v1690_v51 = vmul.f32 -1.442695, %v947_v48 }
 0x378   :  { %v898_v3 = vpop.f32.mrf.mxu1  ;;  %v1821_v6 = vpop.f32.mrf.mxu0 }
 0x379   :  { %1961 = vpow2.f32 %v1690_v51 }
 0x384   :  { %v1960_v52 = vpop.eup %1959 }
 0x385   :  { %v944_v55 = vadd.f32 1.0, %v1960_v52 }
 0x386   :  { %v1962_v57 = vpop.eup %1961 }
 0x387   :  { %1963 = vrcp.f32 %v944_v55  ;;  %v951_v29 = vadd.f32 1.0, %v1962_v57 }
 0x389   :  { %1965 = vrcp.f32 %v951_v29 }
 0x394   :  { %v1964_v43 = vpop.eup %1963 }
 0x395   :  { %v955_v59 = vmul.f32 %v1964_v43, %v954_v34 }
 0x396   :  { %v1966_v5 = vpop.eup %1965 }
 0x397   :  { %v956_v62 = vadd.f32 %v955_v59, %v2484_v44  ;;  %v958_v7 = vsub.f32 1.0, %v1966_v5  ;;  %v960_v47 = vmul.f32 %v1966_v5, %v851_v12 }
 0x399   :  { %1967 = vtanh.f32 %v956_v62 }
 0x3a6   :  { %v1968_v37 = vpop.eup %1967 }
 0x3a7   :  { %v959_v33 = vmul.f32 %v1968_v37, %v958_v7 }
 0x3a9   :  { %v961_v36 = vadd.f32 %v960_v47, %v959_v33 }
 0x3ab   :  { %v965_v16 = vpack.c.bf16 %v961_v36, %v961_v36 }
 0x3ad   :  { %1691 = vmatmul.mubr.msk.bf16.vlgmr.msra.gmra.mxu1 %vm44_vm0, %v965_v16  ;;  %1831 = vmatmul.mubr.msk.bf16.vlgmr.msra.gmra.mxu0 %vm44_vm0, %v965_v16 }
 0x3ae   :  { %1088 = vmatpush1.bf16.msra.mxu1 %v2364_v8  ;;  %1835 = vmatpush3.bf16.msra.mxu0 %v2341_v60 }
 0x3af   :  { %1089 = vmatprep.subr.bf16.mxu1 %v2373_v11  ;;  %1836 = vmatprep.subr.bf16.mxu0 %v2056_v4 }
 0x3b0   :  { %1111 = vmatprep.mubr.bf16.mxu1 %v2058_v31  ;;  %1842 = vmatprep.mubr.msk.bf16.mxu0 %vm2059_vm3, %v2056_v4 }
 0x3b2   :  { %1090 = vmatpush1.bf16.msra.mxu1 %v2390_v18  ;;  %1837 = vmatpush3.bf16.msra.mxu0 %v2352_v0 }
 0x3b3   :  { %1091 = vmatprep.subr.bf16.mxu1 %v2400_v19  ;;  %1838 = vmatprep.subr.bf16.mxu0 %v2056_v4 }
 0x3b6   :  { %1092 = vmatpush1.bf16.msra.mxu1 %v2416_v23  ;;  %1839 = vmatpush3.bf16.msra.mxu0 %v2379_v13 }
 0x3b7   :  { %1093 = vmatprep.subr.bf16.mxu1 %v2425_v24  ;;  %1840 = vmatprep.subr.bf16.mxu0 %v2056_v4 }
 0x3ba   :  { %1094 = vmatpush1.bf16.msra.mxu1 %v2436_v17  ;;  %1841 = vmatpush3.bf16.msra.mxu0 %v2406_v20 }
 0x3bb   :  { %1197 = vmatprep.subr.bf16.mxu1 %v2318_v45  ;;  %1846 = vmatprep.subr.bf16.mxu0 %v2056_v4 }
 0x46d   :  { %v1003_v44 = vpop.f32.mrf.mxu1  ;;  %v1044_v15 = vpop.f32.mrf.mxu0 }
 0x46e   :  { %v1050_v9 = vadd.f32 %v1003_v44, %v2488_v49  ;;  %v1064_v6 = vadd.f32 %v2529_v63, %v1044_v15 }
 0x46f   :  { %v1005_v25 = vpop.f32.mrf.mxu1  ;;  %v1832_v40 = vpop.f32.mrf.mxu0 }
 0x470   :  { %v1693_v12 = vmul.f32 -1.442695, %v1050_v9  ;;  %v1057_v41 = vadd.f32 %v1005_v25, %v2493_v53 }
 0x471   :  { %v1007_v28 = vpop.f32.mrf.mxu1  ;;  %v1047_v54 = vpop.f32.mrf.mxu0 }
 0x472   :  { %1969 = vpow2.f32 %v1693_v12  ;;  %v1694_v38 = vmul.f32 -1.442695, %v1057_v41 }
 0x473   :  { %v1008_v30 = vpop.f32.mrf.mxu1  ;;  %v1833_v35 = vpop.f32.mrf.mxu0 }
 0x474   :  { %1971 = vpow2.f32 %v1694_v38 }
 0x47f   :  { %v1970_v46 = vpop.eup %1969 }
 0x480   :  { %v1054_v39 = vadd.f32 1.0, %v1970_v46 }
 0x481   :  { %v1972_v42 = vpop.eup %1971 }
 0x482   :  { %1973 = vrcp.f32 %v1054_v39  ;;  %v1061_v3 = vadd.f32 1.0, %v1972_v42 }
 0x484   :  { %1975 = vrcp.f32 %v1061_v3 }
 0x48f   :  { %v1974_v49 = vpop.eup %1973 }
 0x490   :  { %v1065_v48 = vmul.f32 %v1974_v49, %v1064_v6 }
 0x491   :  { %v1976_v52 = vpop.eup %1975 }
 0x492   :  { %v1066_v51 = vadd.f32 %v1065_v48, %v2491_v50  ;;  %v1068_v55 = vsub.f32 1.0, %v1976_v52  ;;  %v1070_v53 = vmul.f32 %v1976_v52, %v961_v36 }
 0x494   :  { %1977 = vtanh.f32 %v1066_v51 }
 0x4a1   :  { %v1978_v57 = vpop.eup %1977 }
 0x4a2   :  { %v1069_v29 = vmul.f32 %v1978_v57, %v1068_v55 }
 0x4a4   :  { %v1071_v34 = vadd.f32 %v1070_v53, %v1069_v29 }
 0x4a6   :  { %v1075_v43 = vpack.c.bf16 %v1071_v34, %v1071_v34 }
 0x4a8   :  { %1695 = vmatmul.mubr.msk.bf16.vlgmr.msra.gmra.mxu1 %vm44_vm0, %v1075_v43  ;;  %1843 = vmatmul.mubr.msk.bf16.vlgmr.msra.gmra.mxu0 %vm44_vm0, %v1075_v43 }
 0x4a9   :  { %1198 = vmatpush1.bf16.msra.mxu1 %v2364_v8  ;;  %1847 = vmatpush3.bf16.msra.mxu0 %v2341_v60 }
 0x4aa   :  { %1199 = vmatprep.subr.bf16.mxu1 %v2373_v11  ;;  %1848 = vmatprep.subr.bf16.mxu0 %v2056_v4 }
 0x4ab   :  { %1221 = vmatprep.mubr.bf16.mxu1 %v2058_v31  ;;  %1854 = vmatprep.mubr.msk.bf16.mxu0 %vm2059_vm3, %v2056_v4 }
 0x4ad   :  { %1200 = vmatpush1.bf16.msra.mxu1 %v2390_v18  ;;  %1849 = vmatpush3.bf16.msra.mxu0 %v2352_v0 }
 0x4ae   :  { %1201 = vmatprep.subr.bf16.mxu1 %v2400_v19  ;;  %1850 = vmatprep.subr.bf16.mxu0 %v2056_v4 }
 0x4b1   :  { %1202 = vmatpush1.bf16.msra.mxu1 %v2416_v23  ;;  %1851 = vmatpush3.bf16.msra.mxu0 %v2379_v13 }
 0x4b2   :  { %1203 = vmatprep.subr.bf16.mxu1 %v2425_v24  ;;  %1852 = vmatprep.subr.bf16.mxu0 %v2056_v4 }
 0x4b5   :  { %1204 = vmatpush1.bf16.msra.mxu1 %v2436_v17  ;;  %1853 = vmatpush3.bf16.msra.mxu0 %v2406_v20 }
 0x4b6   :  { %1307 = vmatprep.subr.bf16.mxu1 %v2318_v45  ;;  %1858 = vmatprep.subr.bf16.mxu0 %v2056_v4 }
 0x568   :  { %v1113_v50 = vpop.f32.mrf.mxu1  ;;  %v1154_v59 = vpop.f32.mrf.mxu0 }
 0x569   :  { %v1160_v62 = vadd.f32 %v1113_v50, %v2498_v56  ;;  %v1174_v28 = vadd.f32 %v2529_v63, %v1154_v59 }
 0x56a   :  { %v1115_v5 = vpop.f32.mrf.mxu1  ;;  %v1844_v7 = vpop.f32.mrf.mxu0 }
 0x56b   :  { %v1697_v37 = vmul.f32 -1.442695, %v1160_v62  ;;  %v1167_v44 = vadd.f32 %v1115_v5, %v2500_v58 }
 0x56c   :  { %v1117_v33 = vpop.f32.mrf.mxu1  ;;  %v1157_v47 = vpop.f32.mrf.mxu0 }
 0x56d   :  { %1979 = vpow2.f32 %v1697_v37  ;;  %v1698_v15 = vmul.f32 -1.442695, %v1167_v44 }
 0x56e   :  { %v1118_v36 = vpop.f32.mrf.mxu1  ;;  %v1845_v16 = vpop.f32.mrf.mxu0 }
 0x56f   :  { %1981 = vpow2.f32 %v1698_v15 }
 0x57a   :  { %v1980_v9 = vpop.eup %1979 }
 0x57b   :  { %v1164_v25 = vadd.f32 1.0, %v1980_v9 }
 0x57c   :  { %v1982_v40 = vpop.eup %1981 }
 0x57d   :  { %1983 = vrcp.f32 %v1164_v25  ;;  %v1171_v12 = vadd.f32 1.0, %v1982_v40 }
 0x57f   :  { %1985 = vrcp.f32 %v1171_v12 }
 0x58a   :  { %v1984_v56 = vpop.eup %1983 }
 0x58b   :  { %v1175_v54 = vmul.f32 %v1984_v56, %v1174_v28 }
 0x58c   :  { %v1986_v35 = vpop.eup %1985 }
 0x58d   :  { %v1176_v30 = vadd.f32 %v1175_v54, %v2512_v14  ;;  %v1178_v41 = vsub.f32 1.0, %v1986_v35  ;;  %v1180_v58 = vmul.f32 %v1986_v35, %v1071_v34 }
 0x58f   :  { %1987 = vtanh.f32 %v1176_v30 }
 0x59c   :  { %v1988_v38 = vpop.eup %1987 }
 0x59d   :  { %v1179_v46 = vmul.f32 %v1988_v38, %v1178_v41 }
 0x59f   :  { %v1181_v39 = vadd.f32 %v1180_v58, %v1179_v46  ;;  %v1519_v46 = vld [vmem:[%s2734_s6 + $0x38] sm:$0xff]  ;;  %v1517_v58 = vld [vmem:[%s2734_s6 + $0x28] sm:$0xff] }
 0x5a1   :  { %v1185_v42 = vpack.c.bf16 %v1181_v39, %v1181_v39 }
 0x5a3   :  { %1699 = vmatmul.mubr.msk.bf16.vlgmr.msra.gmra.mxu1 %vm44_vm0, %v1185_v42  ;;  %1855 = vmatmul.mubr.msk.bf16.vlgmr.msra.gmra.mxu0 %vm44_vm0, %v1185_v42  ;;  %v1515_v42 = vld [vmem:[%s2734_s6 + $0x18] sm:$0xff] }
 0x5a4   :  { %1308 = vmatpush1.bf16.msra.mxu1 %v2364_v8  ;;  %1859 = vmatpush3.bf16.msra.mxu0 %v2341_v60 }
 0x5a5   :  { %1309 = vmatprep.subr.bf16.mxu1 %v2373_v11  ;;  %1860 = vmatprep.subr.bf16.mxu0 %v2056_v4 }
 0x5a6   :  { %1331 = vmatprep.mubr.bf16.mxu1 %v2058_v31  ;;  %1866 = vmatprep.mubr.msk.bf16.mxu0 %vm2059_vm3, %v2056_v4 }
 0x5a8   :  { %1310 = vmatpush1.bf16.msra.mxu1 %v2390_v18  ;;  %1861 = vmatpush3.bf16.msra.mxu0 %v2352_v0 }
 0x5a9   :  { %1311 = vmatprep.subr.bf16.mxu1 %v2400_v19  ;;  %1862 = vmatprep.subr.bf16.mxu0 %v2056_v4 }
 0x5ac   :  { %1312 = vmatpush1.bf16.msra.mxu1 %v2416_v23  ;;  %1863 = vmatpush3.bf16.msra.mxu0 %v2379_v13 }
 0x5ad   :  { %1313 = vmatprep.subr.bf16.mxu1 %v2425_v24  ;;  %1864 = vmatprep.subr.bf16.mxu0 %v2056_v4 }
 0x5b0   :  { %1314 = vmatpush1.bf16.msra.mxu1 %v2436_v17  ;;  %1865 = vmatpush3.bf16.msra.mxu0 %v2406_v20 }
 0x5b1   :  { %1417 = vmatprep.subr.bf16.mxu1 %v2318_v45  ;;  %1870 = vmatprep.subr.bf16.mxu0 %v2056_v4 }
 0x663   :  { %v1223_v14 = vpop.f32.mrf.mxu1  ;;  %v1264_v3 = vpop.f32.mrf.mxu0 }
 0x664   :  { %v1270_v6 = vadd.f32 %v1223_v14, %v2502_v61  ;;  %v1284_v62 = vadd.f32 %v2529_v63, %v1264_v3  ;;  %v1514_v14 = vld [vmem:[%s2734_s6 + $0x10] sm:$0xff]  ;;  %v1513_v3 = vld [vmem:[%s2734_s6 + $0x8] sm:$0xff] }
 0x665   :  { %v1225_v49 = vpop.f32.mrf.mxu1  ;;  %v1856_v48 = vpop.f32.mrf.mxu0 }
 0x666   :  { %v1701_v51 = vmul.f32 -1.442695, %v1270_v6  ;;  %v1277_v53 = vadd.f32 %v1225_v49, %v2504_v1  ;;  %v1512_v6 = vld [vmem:[%s2734_s6] sm:$0xff] }
 0x667   :  { %v1227_v52 = vpop.f32.mrf.mxu1  ;;  %v1267_v55 = vpop.f32.mrf.mxu0 }
 0x668   :  { %1989 = vpow2.f32 %v1701_v51  ;;  %v1702_v34 = vmul.f32 -1.442695, %v1277_v53 }
 0x669   :  { %v1228_v57 = vpop.f32.mrf.mxu1  ;;  %v1857_v29 = vpop.f32.mrf.mxu0 }
 0x66a   :  { %1991 = vpow2.f32 %v1702_v34 }
 0x675   :  { %v1990_v43 = vpop.eup %1989 }
 0x676   :  { %v1274_v45 = vadd.f32 1.0, %v1990_v43 }
 0x677   :  { %v1992_v50 = vpop.eup %1991 }
 0x678   :  { %1993 = vrcp.f32 %v1274_v45  ;;  %v1281_v59 = vadd.f32 1.0, %v1992_v50 }
 0x67a   :  { %1995 = vrcp.f32 %v1281_v59 }
 0x685   :  { %v1994_v61 = vpop.eup %1993 }
 0x686   :  { %v1285_v5 = vmul.f32 %v1994_v61, %v1284_v62 }
 0x687   :  { %v1996_v37 = vpop.eup %1995 }
 0x688   :  { %v1286_v7 = vadd.f32 %v1285_v5, %v2522_v27  ;;  %v1288_v33 = vsub.f32 1.0, %v1996_v37  ;;  %v1290_v1 = vmul.f32 %v1996_v37, %v1181_v39  ;;  %v1516_v39 = vld [vmem:[%s2734_s6 + $0x20] sm:$0xff] }
 0x68a   :  { %1997 = vtanh.f32 %v1286_v7 }
 0x697   :  { %v1998_v47 = vpop.eup %1997 }
 0x698   :  { %v1289_v36 = vmul.f32 %v1998_v47, %v1288_v33 }
 0x69a   :  { %v1291_v16 = vadd.f32 %v1290_v1, %v1289_v36 }
 0x69c   :  { %v1295_v44 = vpack.c.bf16 %v1291_v16, %v1291_v16 }
 0x69e   :  { %1703 = vmatmul.mubr.msk.bf16.vlgmr.msra.gmra.mxu1 %vm44_vm0, %v1295_v44  ;;  %1867 = vmatmul.mubr.msk.bf16.vlgmr.msra.gmra.mxu0 %vm44_vm0, %v1295_v44  ;;  %v1711_v44 = vld [vmem:[%s2735_s7] ss:$0 sm:$0xff] }
 0x69f   :  { %1418 = vmatpush1.bf16.msra.mxu1 %v2364_v8  ;;  %1871 = vmatpush3.bf16.msra.mxu0 %v2341_v60 }
 0x6a0   :  { %1419 = vmatprep.subr.bf16.mxu1 %v2373_v11  ;;  %1872 = vmatprep.subr.bf16.mxu0 %v2056_v4 }
 0x6a1   :  { %1441 = vmatprep.mubr.bf16.mxu1 %v2058_v31  ;;  %1878 = vmatprep.mubr.msk.bf16.mxu0 %vm2059_vm3, %v2056_v4 }
 0x6a3   :  { %1420 = vmatpush1.bf16.msra.mxu1 %v2390_v18  ;;  %1873 = vmatpush3.bf16.msra.mxu0 %v2352_v0 }
 0x6a4   :  { %1421 = vmatprep.subr.bf16.mxu1 %v2400_v19  ;;  %1874 = vmatprep.subr.bf16.mxu0 %v2056_v4 }
 0x6a7   :  { %1422 = vmatpush1.bf16.msra.mxu1 %v2416_v23  ;;  %1875 = vmatpush3.bf16.msra.mxu0 %v2379_v13 }
 0x6a8   :  { %1423 = vmatprep.subr.bf16.mxu1 %v2425_v24  ;;  %1876 = vmatprep.subr.bf16.mxu0 %v2056_v4 }
 0x6ab   :  { %1424 = vmatpush1.bf16.msra.mxu1 %v2436_v17  ;;  %1877 = vmatpush3.bf16.msra.mxu0 %v2406_v20 }
 0x6ac   :  { %1882 = vmatprep.subr.mxu1 %v2056_v4 }
 0x75e   :  { %v1333_v31 = vpop.f32.mrf.mxu1  ;;  %v1374_v60 = vpop.f32.mrf.mxu0 }
 0x75f   :  { %v1380_v0 = vadd.f32 %v1333_v31, %v2509_v10  ;;  %v1394_v40 = vadd.f32 %v2529_v63, %v1374_v60 }
 0x760   :  { %v1335_v8 = vpop.f32.mrf.mxu1  ;;  %v1868_v11 = vpop.f32.mrf.mxu0 }
 0x761   :  { %v1705_v18 = vmul.f32 -1.442695, %v1380_v0  ;;  %v1387_v27 = vadd.f32 %v1335_v8, %v2514_v21 }
 0x762   :  { %v1337_v19 = vpop.f32.mrf.mxu1  ;;  %v1377_v23 = vpop.f32.mrf.mxu0 }
 0x763   :  { %1999 = vpow2.f32 %v1705_v18  ;;  %v1706_v15 = vmul.f32 -1.442695, %v1387_v27 }
 0x764   :  { %v1338_v13 = vpop.f32.mrf.mxu1  ;;  %v1869_v24 = vpop.f32.mrf.mxu0 }
 0x765   :  { %2001 = vpow2.f32 %v1706_v15 }
 0x770   :  { %v2000_v17 = vpop.eup %1999 }
 0x771   :  { %v1384_v20 = vadd.f32 1.0, %v2000_v17 }
 0x772   :  { %v2002_v9 = vpop.eup %2001 }
 0x773   :  { %2003 = vrcp.f32 %v1384_v20  ;;  %v1391_v25 = vadd.f32 1.0, %v2002_v9 }
 0x775   :  { %2005 = vrcp.f32 %v1391_v25 }
 0x780   :  { %v2004_v10 = vpop.eup %2003 }
 0x781   :  { %v1395_v12 = vmul.f32 %v2004_v10, %v1394_v40 }
 0x782   :  { %v2006_v56 = vpop.eup %2005 }
 0x783   :  { %v1396_v28 = vadd.f32 %v1395_v12, %v2507_v2  ;;  %v1398_v54 = vsub.f32 1.0, %v2006_v56  ;;  %v1400_v21 = vmul.f32 %v2006_v56, %v1291_v16  ;;  %v1518_v2 = vld [vmem:[%s2734_s6 + $0x30] sm:$0xff] }
 0x785   :  { %2007 = vtanh.f32 %v1396_v28 }
 0x792   :  { %v2008_v30 = vpop.eup %2007 }
 0x793   :  { %v1399_v35 = vmul.f32 %v2008_v30, %v1398_v54 }
 0x795   :  { %v1401_v41 = vadd.f32 %v1400_v21, %v1399_v35 }
 0x797   :  { %v1405_v38 = vpack.c.bf16 %v1401_v41, %v1401_v41 }
 0x799   :  { %1707 = vmatmul.mubr.msk.bf16.vlgmr.msra.gmra.mxu1 %vm44_vm0, %v1405_v38  ;;  %1879 = vmatmul.mubr.msk.bf16.vlgmr.msra.gmra.mxu0 %vm44_vm0, %v1405_v38 }
 0x79a   :  { %1898 = vmatprep.mubr.msk.f32.mxu1 %vm2059_vm3, %v2056_v4  ;;  %1883 = vmatpush3.msra.mxu1 %v1519_v46 }
 0x79b   :  { %1884 = vmatprep.subr.mxu1 %v2056_v4 }
 0x79c   :  { %1885 = vmatpush3.msra.mxu1 %v1518_v2 }
 0x79d   :  { %1886 = vmatprep.subr.mxu1 %v2056_v4 }
 0x79e   :  { %1887 = vmatpush3.msra.mxu1 %v1517_v58 }
 0x79f   :  { %1888 = vmatprep.subr.mxu1 %v2056_v4 }
 0x7a0   :  { %1889 = vmatpush3.msra.mxu1 %v1516_v39 }
 0x7a1   :  { %1890 = vmatprep.subr.mxu1 %v2056_v4 }
 0x7a2   :  { %1891 = vmatpush3.msra.mxu1 %v1515_v42 }
 0x7a3   :  { %1892 = vmatprep.subr.mxu1 %v2056_v4 }
 0x7a4   :  { %1893 = vmatpush3.msra.mxu1 %v1514_v14 }
 0x7a5   :  { %1894 = vmatprep.subr.mxu1 %v2056_v4 }
 0x7a6   :  { %1895 = vmatpush3.msra.mxu1 %v1513_v3 }
 0x7a7   :  { %1896 = vmatprep.subr.mxu1 %v2056_v4 }
 0x7a8   :  { %1897 = vmatpush3.msra.mxu1 %v1512_v6 }
 0x859   :  { %v1443_v49 = vpop.f32.mrf.mxu1  ;;  %v1484_v48 = vpop.f32.mrf.mxu0 }
 0x85a   :  { %v1490_v51 = vadd.f32 %v1443_v49, %v2519_v26  ;;  %v1504_v5 = vadd.f32 %v2529_v63, %v1484_v48 }
 0x85b   :  { %v1445_v52 = vpop.f32.mrf.mxu1  ;;  %v1880_v55 = vpop.f32.mrf.mxu0 }
 0x85c   :  { %v1709_v57 = vmul.f32 -1.442695, %v1490_v51  ;;  %v1497_v45 = vadd.f32 %v1445_v52, %v2524_v32 }
 0x85d   :  { %v1447_v29 = vpop.f32.mrf.mxu1  ;;  %v1487_v53 = vpop.f32.mrf.mxu0 }
 0x85e   :  { %2009 = vpow2.f32 %v1709_v57  ;;  %v1710_v50 = vmul.f32 -1.442695, %v1497_v45 }
 0x85f   :  { %v1448_v34 = vpop.f32.mrf.mxu1  ;;  %v1881_v43 = vpop.f32.mrf.mxu0 }
 0x860   :  { %2011 = vpow2.f32 %v1710_v50 }
 0x86b   :  { %v2010_v59 = vpop.eup %2009 }
 0x86c   :  { %v1494_v62 = vadd.f32 1.0, %v2010_v59 }
 0x86d   :  { %v2012_v4 = vpop.eup %2011 }
 0x86e   :  { %2013 = vrcp.f32 %v1494_v62  ;;  %v1501_v61 = vadd.f32 1.0, %v2012_v4 }
 0x870   :  { %2015 = vrcp.f32 %v1501_v61 }
 0x87b   :  { %v2014_v26 = vpop.eup %2013 }
 0x87c   :  { %v1505_v7 = vmul.f32 %v2014_v26, %v1504_v5 }
 0x87d   :  { %v2016_v33 = vpop.eup %2015 }
 0x87e   :  { %v1506_v37 = vadd.f32 %v1505_v7, %v2517_v22  ;;  %v1508_v47 = vsub.f32 1.0, %v2016_v33  ;;  %v1510_v32 = vmul.f32 %v2016_v33, %v1401_v41 }
 0x880   :  { %2017 = vtanh.f32 %v1506_v37 }
 0x88d   :  { %v2018_v36 = vpop.eup %2017 }
 0x88e   :  { %v1509_v1 = vmul.f32 %v2018_v36, %v1508_v47 }
 0x890   :  { %v1511_v16 = vadd.f32 %v1510_v32, %v1509_v1 }
 0x892   :  { %1899 = vmatmul.mubr.msk.f32.vlgmr.msra.gmra.mxu1 %vm44_vm0, %v1511_v16 }
 0x952   :  { %v1596_v63 = vpop.f32.mrf.mxu1 }
 0x953   :  { %v1597_v31 = vadd.f32 %v1711_v44, %v1596_v63 }
 0x954   :  { %v1900_v22 = vpop.f32.mrf.mxu1 }
 0x955   :  { %1601 = vst.msk [vmem:[#allocation7] sm:$0x3] %vm1600_vm4, %v1597_v31 }
 0x956   :  { %2042 = shalt.err (!%p2039_p9)
}
 0x957   :  { %1611 = dma.vmem_to_hbm [thread:$0]  %s1609_s0, 32, %s2736_s8, [#allocation5]  }
 0x958   :  { %2053 = dma.done.wait [#allocation5], 32  }
 0x959   :  { %2054 = vsyncadd [#allocation5], 4294967264 }
 0x95a   :  { %1615 = vsyncpa [#allocation5], 1 }
 0x95b   :  { %1616 = vsyncpa [#allocation6], 1 }

</bundles_post_ra>
